<compile_context>
chip_gen: v6e
topology: v6e:2x2x1
jax: 0.10.0
libtpu: 0.0.40
codegen_flags: <defaults>
</compile_context>

<pallas_src>
import math

import jax
import jax.numpy as jnp
from jax.experimental import pallas as pl
from jax.experimental.pallas import tpu as pltpu

C_CONST = 8.0  # self.c in the PyTorch module


def _cell_kernel(x_ref, h_ref, w_ref, b_ref, a_ref, o_ref):
    # x_ref, h_ref, o_ref: (bm, D)   w_ref: (D, 2D)   b_ref: (1, 2D)   a_ref: (1, D)
    D = x_ref.shape[-1]

    x = x_ref[...]
    # Single fused matmul for both gates. Operands go to the MXU in the weight
    # dtype (bf16), accumulation in f32.
    z = jnp.dot(x.astype(w_ref.dtype), w_ref[...],
                preferred_element_type=jnp.float32)
    z = z + b_ref[...].astype(jnp.float32)

    # Sigmoid on the full (bm, 2D) block, then lane-aligned slices (D % 128 == 0).
    gates = jax.nn.sigmoid(z)
    rt = gates[:, :D]          # recurrence gate
    it = gates[:, D:]          # input gate

    # a_ref holds the precomputed per-feature constant  -(c * softplus(Lambda)).
    log_at = a_ref[...].astype(jnp.float32) * rt
    at = jnp.exp(log_at)
    # sqrt(1 - at^2) == sqrt((1 - at) * (1 + at)); reuses `at`, no extra EUP op.
    mix = jnp.sqrt((1.0 - at) * (1.0 + at))

    xf = x.astype(jnp.float32)
    hf = h_ref[...].astype(jnp.float32)
    ht = at * hf + mix * (it * xf)
    o_ref[...] = ht.astype(o_ref.dtype)


def prepare_params(Wa, Wx, ba, bx, Lambda, *, weight_dtype=jnp.bfloat16):
    """One-time parameter prep (call OUTSIDE any per-timestep loop).

    Wa, Wx are in PyTorch (out, in) layout; F.linear(x, W) = x @ W.T, so we store
    the transposed weights fused along the output dim, cast to bf16 for the MXU.
    """
    W_fused = jnp.concatenate([Wa.T, Wx.T], axis=1).astype(weight_dtype)   # (D, 2D)
    b_fused = jnp.concatenate([ba, bx], axis=1).astype(jnp.float32)        # (1, 2D)
    a_param = (-(C_CONST * jax.nn.softplus(Lambda))).astype(jnp.float32)   # (1, D)
    return W_fused, b_fused, a_param


def _choose_bm(B, block_m):
    """Largest batch tile <= block_m that divides B and is a multiple of 8
    (or the full batch). Prefer >= 2 grid tiles so dual-TC chips (v7x) use
    both TensorCores on the 'parallel' batch axis."""
    cands = [B] + [m for m in range(8, min(block_m, B) + 1, 8) if B % m == 0]
    legal = [m for m in cands if m <= block_m] or [B]
    bm = max(legal)
    if B // bm < 2:
        multi = [m for m in legal if B // m >= 2]
        if multi:
            bm = max(multi)
    return bm


def _const_spec(shape, single_buffer):
    """Constant-index block: stays VMEM-resident across grid steps."""
    index_map = lambda i: (0, 0)
    if single_buffer:
        try:
            # Keep only ONE VMEM copy of the resident operand (default pipelining
            # allocates two buffers even for a constant index_map). Worth it at
            # production D on v7x's 64 MiB VMEM.
            return pl.BlockSpec(shape, index_map, pipeline_mode=pl.Buffered(1))
        except (TypeError, AttributeError):
            pass
    return pl.BlockSpec(shape, index_map)


def _vmem_limit_bytes(bm, D, io_itemsize, w_itemsize, b_itemsize, a_itemsize,
                      single_buffer_consts):
    const_copies = 1 if single_buffer_consts else 2
    needed = (3 * 2 * bm * D * io_itemsize                       # x, h, out double-buffered
              + const_copies * (D * 2 * D * w_itemsize           # fused weights
                                + 2 * D * b_itemsize             # fused bias
                                + D * a_itemsize))               # decay constant
    try:
        cap = int(pltpu.get_tpu_info().vmem_capacity_bytes)
    except Exception:
        cap = 64 * 1024 * 1024  # conservative: v7x per-core VMEM
    limit = max(2 * needed + (4 << 20), 32 << 20)   # 2x + headroom, >= default 32 MiB
    return int(min(limit, (cap * 3) // 4))          # never request > 3/4 of the chip


def rglru_cell(xt, ht_minus_1, W_fused, b_fused, a_param, *,
               block_m=512, single_buffer_consts=False):
    """xt, ht_minus_1: (B, D). W_fused: (D, 2D). b_fused: (1, 2D). a_param: (1, D)."""
    B, D = xt.shape
    assert ht_minus_1.shape == (B, D)
    assert W_fused.shape == (D, 2 * D)

    bm = _choose_bm(B, block_m)
    grid = (B // bm,)

    row_spec = pl.BlockSpec((bm, D), lambda i: (i, 0))

    vmem_limit = _vmem_limit_bytes(
        bm, D,
        xt.dtype.itemsize, W_fused.dtype.itemsize,
        b_fused.dtype.itemsize, a_param.dtype.itemsize,
        single_buffer_consts,
    )

    return pl.pallas_call(
        _cell_kernel,
        out_shape=jax.ShapeDtypeStruct((B, D), ht_minus_1.dtype),
        grid_spec=pltpu.PrefetchScalarGridSpec(
            num_scalar_prefetch=0,
            grid=grid,
            in_specs=[
                row_spec,                                            # xt tile
                row_spec,                                            # ht_minus_1 tile
                _const_spec((D, 2 * D), single_buffer_consts),       # [Wa^T | Wx^T]
                _const_spec((1, 2 * D), single_buffer_consts),       # [ba | bx]
                _const_spec((1, D), single_buffer_consts),           # -(c*softplus(Lambda))
            ],
            out_specs=row_spec,
        ),
        # Write ht in place over the ht_minus_1 buffer (state update).
        input_output_aliases={1: 0},
        compiler_params=pltpu.CompilerParams(
            dimension_semantics=("parallel",),
            vmem_limit_bytes=vmem_limit,
        ),
    )(xt, ht_minus_1, W_fused, b_fused, a_param)


def init_params(key, rnn_width):
    """Deterministic init matching the PyTorch reset_parameter() distributions."""
    k_wa, k_wx, k_lam = jax.random.split(key, 3)
    # kaiming_normal_ with nonlinearity='sigmoid' -> gain=1, std = 1/sqrt(fan_in)
    std = 1.0 / math.sqrt(rnn_width)
    Wa = std * jax.random.normal(k_wa, (rnn_width, rnn_width), dtype=jnp.float32)
    Wx = std * jax.random.normal(k_wx, (rnn_width, rnn_width), dtype=jnp.float32)
    ba = jnp.zeros((1, rnn_width), dtype=jnp.float32)
    bx = jnp.zeros((1, rnn_width), dtype=jnp.float32)

    def logit(p):
        return math.log(p / (1.0 - p))

    lo = logit(0.9 ** (1.0 / C_CONST))
    hi = logit(0.999 ** (1.0 / C_CONST))
    Lambda = jax.random.uniform(
        k_lam, (1, rnn_width), dtype=jnp.float32, minval=lo, maxval=hi
    )
    return Wa, Wx, ba, bx, Lambda


def _reference_f32(xt, h, Wa, Wx, ba, bx, Lambda):
    """Exact PyTorch-semantics reference in f32."""
    rt = jax.nn.sigmoid(xt @ Wa.T + ba)
    it = jax.nn.sigmoid(xt @ Wx.T + bx)
    at = jnp.exp(-(C_CONST * jax.nn.softplus(Lambda)) * rt)
    return at * h + jnp.sqrt(1.0 - at**2) * (it * xt)


def _reference_bf16_gates(xt, h, W_fused, b_fused, a_param):
    """Reference mirroring the kernel's bf16 gate matmul (tight-tolerance check)."""
    D = xt.shape[-1]
    z = jnp.dot(xt.astype(W_fused.dtype), W_fused,
                preferred_element_type=jnp.float32) + b_fused
    g = jax.nn.sigmoid(z)
    rt, it = g[:, :D], g[:, D:]
    at = jnp.exp(a_param * rt)
    mix = jnp.sqrt((1.0 - at) * (1.0 + at))
    return at * h.astype(jnp.float32) + mix * (it * xt.astype(jnp.float32))


if __name__ == "__main__":
    key = jax.random.PRNGKey(0)
    k_p, k_x, k_h = jax.random.split(key, 3)

    batch = 512       # tile picker -> 2 x 256-row tiles (both TCs busy on v7x)
    rnn_width = 128   # lane-aligned feature dim (D % 128 == 0)

    Wa, Wx, ba, bx, Lambda = init_params(k_p, rnn_width)
    xt = jax.random.normal(k_x, (batch, rnn_width), dtype=jnp.float32)
    ht_minus_1 = jax.random.normal(k_h, (batch, rnn_width), dtype=jnp.float32)

    # One-time parameter prep (transpose + fuse + softplus hoist + bf16 cast).
    W_fused, b_fused, a_param = prepare_params(Wa, Wx, ba, bx, Lambda)

    # Compute references BEFORE the kernel call: ht_minus_1 is donated below.
    ref_f32 = _reference_f32(xt, ht_minus_1, Wa, Wx, ba, bx, Lambda)
    ref_bf16 = _reference_bf16_gates(xt, ht_minus_1, W_fused, b_fused, a_param)

    # jit + donate the state buffer so input_output_aliases={1: 0} truly aliases.
    step = jax.jit(rglru_cell,
                   static_argnames=("block_m", "single_buffer_consts"),
                   donate_argnums=(1,))
    ht = step(xt, ht_minus_1, W_fused, b_fused, a_param)
    ht = jax.block_until_ready(ht)

    # Tight check vs a reference with the same bf16 gate matmul.
    assert jnp.allclose(ht, ref_bf16, atol=2e-3, rtol=2e-3), \
        "mismatch vs bf16-gate reference"
    # Looser check vs the exact f32 PyTorch-semantics reference (bf16 gate
    # logits lose ~3 decimal digits, as expected).
    assert jnp.allclose(ht, ref_f32, atol=5e-2, rtol=5e-2), \
        "mismatch vs f32 reference"

    print("KERNEL_OK")
</pallas_src>

<mosaic_0001>
module attributes {stable_mosaic.version = 11 : i64} {
  func.func @_cell_kernel(%arg0: i32, %arg1: memref<256x128xf32, #tpu.memory_space<vmem>>, %arg2: memref<256x128xf32, #tpu.memory_space<vmem>>, %arg3: memref<128x256xbf16, #tpu.memory_space<vmem>>, %arg4: memref<1x256xf32, #tpu.memory_space<vmem>>, %arg5: memref<1x128xf32, #tpu.memory_space<vmem>>, %arg6: memref<256x128xf32, #tpu.memory_space<vmem>>) attributes {dimension_semantics = [#tpu.dimension_semantics<parallel>], iteration_bounds = array<i64: 2>, scalar_prefetch = 0 : i64, scratch_operands = 0 : i64, tpu.core_type = #tpu.core_type<tc>, window_params = [{transform_indices = @transform_0, window_bounds = array<i64: 256, 128>}, {transform_indices = @transform_1, window_bounds = array<i64: 256, 128>}, {pipeline_mode = #tpu.pipeline_mode<synchronous>, transform_indices = @transform_2, window_bounds = array<i64: 128, 256>}, {pipeline_mode = #tpu.pipeline_mode<synchronous>, transform_indices = @transform_3, window_bounds = array<i64: 1, 256>}, {pipeline_mode = #tpu.pipeline_mode<synchronous>, transform_indices = @transform_4, window_bounds = array<i64: 1, 128>}, {transform_indices = @transform_5, window_bounds = array<i64: 256, 128>}]} {
    %c0 = arith.constant 0 : index
    %c0_0 = arith.constant 0 : index
    %0 = vector.load %arg1[%c0, %c0_0] : memref<256x128xf32, #tpu.memory_space<vmem>>, vector<256x128xf32>
    %1 = arith.truncf %0 : vector<256x128xf32> to vector<256x128xbf16>
    %c0_1 = arith.constant 0 : index
    %c0_2 = arith.constant 0 : index
    %2 = vector.load %arg3[%c0_1, %c0_2] : memref<128x256xbf16, #tpu.memory_space<vmem>>, vector<128x256xbf16>
    %cst = arith.constant dense<0.000000e+00> : vector<256x256xf32>
    %3 = tpu.matmul %1, %2, %cst {dimension_numbers = #tpu.dot_dimension_numbers<[1], [0], [0], [1], [0, 0, 1, 1], [], []>} : vector<256x128xbf16>, vector<128x256xbf16>, vector<256x256xf32> -> vector<256x256xf32>
    %c0_3 = arith.constant 0 : index
    %c0_4 = arith.constant 0 : index
    %4 = vector.load %arg4[%c0_3, %c0_4] : memref<1x256xf32, #tpu.memory_space<vmem>>, vector<1x256xf32>
    %5 = vector.broadcast %4 : vector<1x256xf32> to vector<256x256xf32>
    %6 = arith.addf %3, %5 : vector<256x256xf32>
    %7 = arith.negf %6 : vector<256x256xf32>
    %8 = math.exp %7 : vector<256x256xf32>
    %cst_5 = arith.constant 1.000000e+00 : f32
    %9 = vector.broadcast %cst_5 : f32 to vector<256x256xf32>
    %10 = arith.addf %9, %8 : vector<256x256xf32>
    %11 = arith.divf %9, %10 : vector<256x256xf32>
    %12 = vector.extract_strided_slice %11 {offsets = [0, 0], sizes = [256, 128], strides = [1, 1]} : vector<256x256xf32> to vector<256x128xf32>
    %13 = vector.extract_strided_slice %11 {offsets = [0, 128], sizes = [256, 128], strides = [1, 1]} : vector<256x256xf32> to vector<256x128xf32>
    %c0_6 = arith.constant 0 : index
    %c0_7 = arith.constant 0 : index
    %14 = vector.load %arg5[%c0_6, %c0_7] : memref<1x128xf32, #tpu.memory_space<vmem>>, vector<1x128xf32>
    %15 = vector.broadcast %14 : vector<1x128xf32> to vector<256x128xf32>
    %16 = arith.mulf %15, %12 : vector<256x128xf32>
    %17 = math.exp %16 : vector<256x128xf32>
    %cst_8 = arith.constant 1.000000e+00 : f32
    %18 = vector.broadcast %cst_8 : f32 to vector<256x128xf32>
    %19 = arith.subf %18, %17 : vector<256x128xf32>
    %cst_9 = arith.constant 1.000000e+00 : f32
    %20 = vector.broadcast %cst_9 : f32 to vector<256x128xf32>
    %21 = arith.addf %20, %17 : vector<256x128xf32>
    %22 = arith.mulf %19, %21 : vector<256x128xf32>
    %23 = math.sqrt %22 : vector<256x128xf32>
    %c0_10 = arith.constant 0 : index
    %c0_11 = arith.constant 0 : index
    %24 = vector.load %arg2[%c0_10, %c0_11] : memref<256x128xf32, #tpu.memory_space<vmem>>, vector<256x128xf32>
    %25 = arith.mulf %17, %24 : vector<256x128xf32>
    %26 = arith.mulf %13, %0 : vector<256x128xf32>
    %27 = arith.mulf %23, %26 : vector<256x128xf32>
    %28 = arith.addf %25, %27 : vector<256x128xf32>
    %c0_12 = arith.constant 0 : index
    %c0_13 = arith.constant 0 : index
    %29 = vector.load %arg6[%c0_12, %c0_13] : memref<256x128xf32, #tpu.memory_space<vmem>>, vector<256x128xf32>
    tpu.vector_store %arg6[%c0_12, %c0_13], %28 {strides = array<i32>} : memref<256x128xf32, #tpu.memory_space<vmem>>, vector<256x128xf32>,
    return
  }
  func.func @transform_0(%arg0: i32) -> (i32, i32) {
    %c0_i32 = arith.constant 0 : i32
    %c0_i32_0 = arith.constant 0 : i32
    return %arg0, %c0_i32 : i32, i32
  }
  func.func @transform_1(%arg0: i32) -> (i32, i32) {
    %c0_i32 = arith.constant 0 : i32
    %c0_i32_0 = arith.constant 0 : i32
    return %arg0, %c0_i32 : i32, i32
  }
  func.func @transform_2(%arg0: i32) -> (i32, i32) {
    %c0_i32 = arith.constant 0 : i32
    %c0_i32_0 = arith.constant 0 : i32
    %c0_i32_1 = arith.constant 0 : i32
    return %c0_i32, %c0_i32_0 : i32, i32
  }
  func.func @transform_3(%arg0: i32) -> (i32, i32) {
    %c0_i32 = arith.constant 0 : i32
    %c0_i32_0 = arith.constant 0 : i32
    %c0_i32_1 = arith.constant 0 : i32
    return %c0_i32, %c0_i32_0 : i32, i32
  }
  func.func @transform_4(%arg0: i32) -> (i32, i32) {
    %c0_i32 = arith.constant 0 : i32
    %c0_i32_0 = arith.constant 0 : i32
    %c0_i32_1 = arith.constant 0 : i32
    return %c0_i32, %c0_i32_0 : i32, i32
  }
  func.func @transform_5(%arg0: i32) -> (i32, i32) {
    %c0_i32 = arith.constant 0 : i32
    %c0_i32_0 = arith.constant 0 : i32
    return %arg0, %c0_i32 : i32, i32
  }
}

</mosaic_0001>

<bundles_post_ra>
// kernel: rglru_cell.1
= control target key start
LH: loop header
LB: loop body
LE: loop exit
PB: predicated region body
PF: predicated region fallthrough
CT: control target
= control target key end

     0   :  { %s3665_s0 = inlined_call_operand.hbm [shape: f32[512,128], index: 0, kind: input, shape index: {}]   ;;  %s3666_s1 = inlined_call_operand.hbm [shape: f32[512,128], index: 1, kind: input, shape index: {}, may-alias: {1,5}]   ;;  %s3667_s2 = inlined_call_operand.hbm [shape: bf16[128,256], index: 2, kind: input, shape index: {}]   ;;  %s3668_s3 = inlined_call_operand.vmem [shape: f32[1,256], index: 3, kind: input, shape index: {}]   ;;  %s3669_s4 = inlined_call_operand.vmem [shape: f32[1,128], index: 4, kind: input, shape index: {}]   ;;  %s3670_s5 = inlined_call_operand.hbm [shape: f32[512,128], index: 5, kind: output, shape index: {}, may-alias: {1,5}]  }
   0x1   :  { %3679 = sst [smem:[#allocation15_spill]] %s3665_s0 }
   0x2   :  { %3680 = sst [smem:[#allocation16_spill]] %s3667_s2 }
   0x3   :  { %10 = vsyncpa [#allocation3], 0 }
   0x4   :  { %12 = vsyncpa [#allocation3 + $0x1], 0 }
   0x5   :  { %13 = vsyncpa [#allocation6], 0 }
   0x6   :  { %15 = vsyncpa [#allocation6 + $0x1], 0 }
   0x7   :  { %16 = vsyncpa [#allocation4], 0 }
   0x8   :  { %18 = vsyncpa [#allocation4 + $0x1], 0  ;;  %s2583_s18 = smov 0   ;;  %s2585_s19 = smov 0  }
   0x9   :  { %s2587_s20 = smov 0   ;;  %s2589_s21 = smov 0  }
   0xa LB: > { %3681 = sst [smem:[#allocation13_spill]] %s2538_s20  ;;  %s2604_s22 = sadd.s32 4294967295, %s2542_s21   ;;  %s2542_s21 = sphi %s2589_s21, %s3704_s21   ;;  %s2538_s20 = sphi %s2587_s20, %s3701_s20   ;;  %s2534_s19 = sphi %s2585_s19, %s3703_s19   ;;  %s2530_s18 = sphi %s2583_s18, %s3702_s18  }
   0xb   : > { %s1768_s23 = sadd.s32 4294967294, %s2542_s21   ;;  %p44_p0 = scmp.ne.s32.totalorder %s2534_s19, %s2530_s18 }
   0xc   : > { %p3675_p1 = scmp.eq.s32.totalorder %s2604_s22, 0  ;;  %p163_p3 = scmp.eq.s32.totalorder %s1768_s23, 1 }
   0xd   : > { %p1769_p5 = scmp.ge.s32.totalorder %s2542_s21, 1  ;;  %p170_p7 = scmp.lt.s32.totalorder %s2542_s21, 3 }
   0xe   : > { %p2613_p4 = por %p3675_p1, %p44_p0  ;;  %p2618_p6 = por %p163_p3, %p44_p0 }
   0xf   : > { %p2623_p8 = pnand %p1769_p5, %p170_p7  ;;  %s2544_s27 = smov [#allocation7]  }
  0x10   : > { %s3682_s24 = scalar_select %p2613_p4, 1, 0 }
  0x11   : > { %s3683_s25 = scalar_select %p2618_p6, 1, 0 }
  0x12   : > { %s182_s28 = sshll.u32 %s2544_s27, 4  ;;  %p1898_p9 = pneg %p2623_p8  ;;  %s183_s28 = int_to_ptr.vmem [resolvable:$true] %s182_s28 }
  0x13   : > { %s2637_s30 = sadd.s32 1, %s2542_s21   ;;  %s31_s6 = sadd.s32 1, %s2538_s20 }
  0x14   : > { %p2632_p11 = pnand %p1898_p9, %p3675_p1  ;;  %s28_s7 = ssub.s32 %s2542_s21, %s2637_s30 }
  0x15   : > { %s2399_s8 = scalar_lea.vmem %s183_s28, 2048  ;;  %p2407_p5 = scmp.lt.s32.totalorder %s183_s28, %s183_s28 }
  0x16   : > { %p2390_p12 = pneg %p2632_p11  ;;  %p2400_p13 = scmp.ne.s32.totalorder %s183_s28, %s2399_s8 }
  0x17   : > { %p2408_p7 = scmp.lt.s32.totalorder %s2399_s8, %s2399_s8 }
  0x18   : > { %p2402_p0 = pnand %p2400_p13, %p2390_p12 }
  0x19   : > { %p2409_p10 = por %p2408_p7, %p2407_p5 }
  0x1a   : > { %p2403_p3 = pneg %p2402_p0 }
  0x1c   : > { %p2410_p2 = pnand %p2409_p10, %p2403_p3 }
  0x1e   : > { %2413 = shalt.err (!%p2410_p2)
}
  0x1f   : > { %s3671_s9 = smov 128   ;;  %s3673_s10 = smov 8  }
  0x20   : > { %s3686_s2 = sld [smem:[#allocation16_spill]]  ;;  %p29_p2 = scmp.eq.s32.totalorder %s28_s7, 0 }
  0x21   : > { %p38_p9 = scmp.ne.s32.totalorder %s2538_s20, %s2534_s19  ;;  %p39_p10 = scmp.eq.s32.totalorder %s2542_s21, 0 }
  0x22   : > { %p1914_p12 = scmp.lt.s32.totalorder %s2542_s21, 2  ;;  %p3688_p0 = scmp.eq.s32.totalorder %s2604_s22, 1 }
  0x23   : > { %s2657_s13 = scalar_select %p29_p2, %s2538_s20, %s31_s6  }
  0x24   : > { %p40_p13 = por %p39_p10, %p38_p9  ;;  %p2661_p3 = por %p3688_p0, %p38_p9 }
  0x25   : > { %3687 = sst [smem:[#allocation14_spill]] %s2657_s13  ;;  %s202_s15 = sand.u32 1, %s2538_s20  }
  0x26   : > { %1901 = dma.hbm_to_vmem [thread:$0]  (!%p2632_p11), %s3686_s2, 2048, %s183_s28, [#allocation6], %s3671_s9, %s3671_s9, %s3673_s10  }
  0x27   : > { %s3689_s14 = scalar_select %p2661_p3, 1, 0 }
  0x28   : > { %s1869_s16 = sshll.u32 %s2542_s21, 12  ;;  %s2667_s17 = sshll.u32 %s202_s15, 8 }
  0x29   : > { %s3690_s0 = sld [smem:[#allocation15_spill]]  ;;  %s206_s29 = scalar_lea.vmem [#allocation2], %s2667_s17 }
  0x2a   : > { %s213_s6 = sshll.u32 %s206_s29, 4  ;;  %p2675_p11 = pnand %p1914_p12, %p40_p13  ;;  %s2679_s6 = int_to_ptr.vmem [resolvable:$true] %s213_s6 }
  0x2b   : > { %s2684_s12 = scalar_lea.hbm %s3666_s1, %s1869_s16  ;;  %s2686_s23 = scalar_lea.sflag [#allocation3], %s202_s15 }
  0x2c   : > { %p2416_p7 = pneg %p2675_p11 }
  0x2f   : > { %s2672_s28 = scalar_lea.hbm %s3690_s0, %s1869_s16  ;;  %s2419_s10 = scalar_lea.hbm %s3690_s0, 8192 }
  0x30   : > { %s2414_s27 = scalar_lea.hbm %s2672_s28, 4096  ;;  %p2420_p10 = scmp.lt.s32.totalorder %s2672_s28, %s3690_s0 }
  0x31   : > { %p2415_p5 = scmp.ne.s32.totalorder %s2672_s28, %s2414_s27  ;;  %p2421_p12 = scmp.lt.s32.totalorder %s2419_s10, %s2414_s27 }
  0x33   : > { %p2417_p2 = pnand %p2416_p7, %p2415_p5  ;;  %p2422_p13 = por %p2421_p12, %p2420_p10 }
  0x35   : > { %p2418_p9 = pneg %p2417_p2 }
  0x37   : > { %p2423_p0 = pnand %p2422_p13, %p2418_p9 }
  0x39   : > { %2426 = shalt.err (!%p2423_p0)
}
  0x3a   : > { %s2427_s15 = scalar_lea.vmem %s2679_s6, 4096  ;;  %s2547_s9 = smov [#allocation2]  }
  0x3b   : > { %p2428_p1 = scmp.ne.s32.totalorder %s2679_s6, %s2427_s15  ;;  %s2432_s16 = sshll.u32 %s2547_s9, 4  ;;  %s2433_s16 = int_to_ptr.vmem [resolvable:$false] %s2432_s16 }
  0x3c   : > { %s2434_s8 = scalar_lea.vmem %s2433_s16, 8192  ;;  %p2435_p6 = scmp.lt.s32.totalorder %s2679_s6, %s2433_s16 }
  0x3d   : > { %p2430_p5 = pnand %p2428_p1, %p2416_p7  ;;  %p2436_p3 = scmp.lt.s32.totalorder %s2434_s8, %s2427_s15 }
  0x3f   : > { %p2431_p2 = pneg %p2430_p5  ;;  %p2437_p4 = por %p2436_p3, %p2435_p6 }
  0x41   : > { %p2438_p10 = pnand %p2437_p4, %p2431_p2 }
  0x43   : > { %2441 = shalt.err (!%p2438_p10)
}
  0x44   : > { %s3692_s2 = smov 8   ;;  %s3693_s10 = smov 128  }
  0x45   : > { %1905 = dma.hbm_to_vmem [thread:$0]  (!%p2675_p11), %s2672_s28, 4096, %s2679_s6, %s2686_s23, %s3693_s10, %s3693_s10, %s3692_s2  }
  0x46   : > { %s227_s13 = scalar_lea.vmem [#allocation5], %s2667_s17  ;;  %s223_s27 = sand.u32 1, %s2542_s21  }
  0x47   : > { %s234_s11 = sshll.u32 %s227_s13, 4  ;;  %s224_s29 = scalar_lea.sflag [#allocation6], %s223_s27  ;;  %s2718_s11 = int_to_ptr.vmem [resolvable:$true] %s234_s11 }
  0x48   : > { %s2442_s15 = scalar_lea.hbm %s2684_s12, 4096  ;;  %s2447_s8 = scalar_lea.hbm %s3666_s1, 8192 }
  0x49   : > { %p2443_p1 = scmp.ne.s32.totalorder %s2684_s12, %s2442_s15  ;;  %p2448_p3 = scmp.lt.s32.totalorder %s2684_s12, %s3666_s1 }
  0x4a   : > { %p2449_p9 = scmp.lt.s32.totalorder %s2447_s8, %s2442_s15 }
  0x4b   : > { %p2445_p4 = pnand %p2443_p1, %p2416_p7 }
  0x4c   : > { %p2450_p12 = por %p2449_p9, %p2448_p3 }
  0x4d   : > { %p2446_p6 = pneg %p2445_p4 }
  0x4f   : > { %p2451_p13 = pnand %p2450_p12, %p2446_p6 }
  0x51   : > { %2454 = shalt.err (!%p2451_p13)
}
  0x52   : > { %s2455_s17 = scalar_lea.vmem %s2718_s11, 4096  ;;  %s2548_s28 = smov [#allocation5]  }
  0x53   : > { %p2456_p0 = scmp.ne.s32.totalorder %s2718_s11, %s2455_s17  ;;  %s2460_s6 = sshll.u32 %s2548_s28, 4  ;;  %s2461_s6 = int_to_ptr.vmem [resolvable:$false] %s2460_s6 }
  0x54   : > { %s2462_s23 = scalar_lea.vmem %s2461_s6, 8192  ;;  %p2463_p10 = scmp.lt.s32.totalorder %s2718_s11, %s2461_s6 }
  0x55   : > { %p2458_p5 = pnand %p2456_p0, %p2416_p7  ;;  %p2464_p1 = scmp.lt.s32.totalorder %s2462_s23, %s2455_s17 }
  0x57   : > { %p2459_p2 = pneg %p2458_p5  ;;  %p2465_p4 = por %p2464_p1, %p2463_p10 }
  0x59   : > { %p2466_p3 = pnand %p2465_p4, %p2459_p2 }
  0x5b   : > { %2469 = shalt.err (!%p2466_p3)
}
  0x5c   : > { %1908 = dma.hbm_to_vmem [thread:$0]  (!%p2675_p11), %s2684_s12, 4096, %s2718_s11, %s224_s29, %s3693_s10, %s3693_s10, %s3692_s2  }
  0x5d   : > { %246 = sbr.rel (%p2623_p8) target bundleno = 626 (0x272), region = 40  ;;  %s2748_s0 = sand.u32 (!%p2623_p8), 1, %s2534_s19  }
  0x5e   : > { %s2751_s20 = sshll.u32 (!%p2623_p8), %s2748_s0, 8  ;;  %s249_s13 = scalar_lea.sflag (!%p2623_p8), [#allocation3], %s2748_s0 }
  0x5f   : > { %s2755_s7 = scalar_lea.vmem (!%p2623_p8), [#allocation2], %s2751_s20  ;;  %p3694_p7 = scmp.ne.s32.totalorder (!%p2623_p8), %s3682_s24, 0 }
  0x62   : > { %2513 = dma.done.wait (%p3694_p7), %s249_s13, 4096  }
  0x63   : > { %2515 = vsyncadd (%p3694_p7), %s249_s13, 4294963200  ;;  %s257_s26 = sand.u32 1, %s2604_s22   ;;  %s2763_s2 = scalar_lea.vmem [#allocation5], %s2751_s20 }
  0x64   : > { %s258_s12 = scalar_lea.sflag [#allocation6], %s257_s26 }
  0x65   : > { %2517 = dma.done.wait (%p3694_p7), %s258_s12, 4096  }
  0x66   : > { %2519 = vsyncadd (%p3694_p7), %s258_s12, 4294963200  ;;  %p3695_p8 = scmp.eq.s32.totalorder %s2604_s22, 0 }
  0x68   : > { %2521 = dma.done.wait (%p3695_p8), [#allocation6], 2048   ;;  %p3696_p11 = pmov %p3695_p8 }
  0x69   : > { %v2549_v0 = vmov 0   ;;  %v1955_v1 = vld [vmem:[#allocation7 + $0x74] ss:$8 sps:$4 sm:$0xff]   ;;  %v1957_v2 = vld [vmem:[#allocation7 + $0x70] ss:$8 sps:$4 sm:$0xff]   ;;  %v2776_v17 = vld [vmem:[%s2755_s7] sm:$0xff] }
  0x6a   : > { %2523 = vsyncadd (%p3696_p11), [#allocation6], 4294965248  ;;  %489 = vmatprep.mubr.bf16.mxu0 %v2549_v0  ;;  %569 = vmatprep.mubr.bf16.mxu1 %v2549_v0  ;;  %v1958_v3 = vld [vmem:[#allocation7 + $0x64] ss:$8 sps:$4 sm:$0xff]   ;;  %v1960_v4 = vld [vmem:[#allocation7 + $0x60] ss:$8 sps:$4 sm:$0xff]  }
  0x6b   : > { %457 = vmatprep.subr.bf16.mxu0 %v1955_v1  ;;  %1872 = vmatprep.subr.bf16.mxu1 %v1955_v1  ;;  %v1961_v5 = vld [vmem:[#allocation7 + $0x54] ss:$8 sps:$4 sm:$0xff]   ;;  %v1963_v6 = vld [vmem:[#allocation7 + $0x50] ss:$8 sps:$4 sm:$0xff]   ;;  %v1964_v7 = vld [vmem:[#allocation7 + $0x44] ss:$8 sps:$4 sm:$0xff]  }
  0x6c   : > { %458 = vmatpush1.bf16.msra.mxu0 %v1957_v2  ;;  %1880 = vmatpush1.bf16.msra.mxu1 %v1957_v2  ;;  %v1966_v8 = vld [vmem:[#allocation7 + $0x40] ss:$8 sps:$4 sm:$0xff]   ;;  %v1967_v9 = vld [vmem:[#allocation7 + $0x34] ss:$8 sps:$4 sm:$0xff]   ;;  %v1969_v10 = vld [vmem:[#allocation7 + $0x30] ss:$8 sps:$4 sm:$0xff]   ;;  %v367_v2 = vlaneseq }
  0x6d   : > { %459 = vmatprep.subr.bf16.mxu0 %v1958_v3  ;;  %1873 = vmatprep.subr.bf16.mxu1 %v1958_v3  ;;  %v1970_v11 = vld [vmem:[#allocation7 + $0x24] ss:$8 sps:$4 sm:$0xff]   ;;  %v1972_v12 = vld [vmem:[#allocation7 + $0x20] ss:$8 sps:$4 sm:$0xff]   ;;  %v1973_v13 = vld [vmem:[#allocation7 + $0x14] ss:$8 sps:$4 sm:$0xff]  }
  0x6e   : > { %v1975_v14 = vld [vmem:[#allocation7 + $0x10] ss:$8 sps:$4 sm:$0xff]   ;;  %v1976_v15 = vld [vmem:[#allocation7 + $0x4] ss:$8 sps:$4 sm:$0xff]   ;;  %v1978_v16 = vld [vmem:[#allocation7] ss:$8 sps:$4 sm:$0xff]  }
  0x6f   : > { %v2779_v18 = vld [vmem:[%s2755_s7 + $0x8] sm:$0xff]  ;;  %v2782_v19 = vld [vmem:[%s2755_s7 + $0x80] sm:$0xff]  ;;  %v2792_v23 = vld [vmem:[%s2755_s7 + $0x10] sm:$0xff]  ;;  %v368_v3 = vshrl.u32 %v367_v2, 7  ;;  %s3057_s29 = scalar_lea.vmem [#allocation8], %s2751_s20  ;;  %s1871_s16 = sshll.u32 %s2604_s22, 12 }
  0x70   : > { %460 = vmatpush1.bf16.msra.mxu0 %v1960_v4  ;;  %1881 = vmatpush1.bf16.msra.mxu1 %v1960_v4  ;;  %v2785_v20 = vld [vmem:[%s2755_s7 + $0x88] sm:$0xff]  ;;  %v333_v21 = vpack.c.bf16 %v2779_v18, %v2776_v17  ;;  %v2797_v24 = vld [vmem:[%s2755_s7 + $0x18] sm:$0xff]  ;;  %v2800_v25 = vld [vmem:[%s2755_s7 + $0x90] sm:$0xff]  ;;  %s1663_s8 = sshll.u32 %s3057_s29, 4  ;;  %s3619_s6 = scalar_lea.hbm %s3670_s5, %s1871_s16  ;;  %s3621_s8 = int_to_ptr.vmem [resolvable:$true] %s1663_s8 }
  0x71   : > { %461 = vmatprep.subr.bf16.mxu0 %v1961_v5  ;;  %1874 = vmatprep.subr.bf16.mxu1 %v1961_v5  ;;  %v341_v22 = vpack.c.bf16 %v2785_v20, %v2782_v19  ;;  %v2803_v26 = vld [vmem:[%s2755_s7 + $0x98] sm:$0xff]  ;;  %v334_v27 = vpack.c.bf16 %v2797_v24, %v2792_v23  ;;  %v305_v29 = vld [vmem:[%s2755_s7 + $0x20] sm:$0xff]  ;;  %v306_v30 = vld [vmem:[%s2755_s7 + $0x28] sm:$0xff]  ;;  %v369_v4 = vsub.s32 0, %v368_v3  ;;  %s1650_s22 = scalar_lea.sflag [#allocation4], %s2748_s0  ;;  %s2470_s23 = scalar_lea.vmem %s3621_s8, 4096 }
  0x72   : > { %v342_v28 = vpack.c.bf16 %v2803_v26, %v2800_v25  ;;  %v321_v31 = vld [vmem:[%s2755_s7 + $0xa0] sm:$0xff]  ;;  %v322_v32 = vld [vmem:[%s2755_s7 + $0xa8] sm:$0xff]  ;;  %v335_v33 = vpack.c.bf16 %v306_v30, %v305_v29  ;;  %v307_v35 = vld [vmem:[%s2755_s7 + $0x30] sm:$0xff]  ;;  %p2471_p6 = scmp.ne.s32.totalorder %s3621_s8, %s2470_s23  ;;  %p3697_p9 = scmp.ne.s32.totalorder %s3689_s14, 0 }
  0x73   : > { %v343_v34 = vpack.c.bf16 %v322_v32, %v321_v31  ;;  %v308_v36 = vld [vmem:[%s2755_s7 + $0x38] sm:$0xff]  ;;  %v323_v37 = vld [vmem:[%s2755_s7 + $0xb0] sm:$0xff]  ;;  %v309_v41 = vld [vmem:[%s2755_s7 + $0x40] sm:$0xff]  ;;  %s2550_s20 = smov [#allocation8]  }
  0x74   : > { %462 = vmatpush1.bf16.msra.mxu0 %v1963_v6  ;;  %1882 = vmatpush1.bf16.msra.mxu1 %v1963_v6  ;;  %v324_v38 = vld [vmem:[%s2755_s7 + $0xb8] sm:$0xff]  ;;  %v336_v39 = vpack.c.bf16 %v308_v36, %v307_v35  ;;  %v310_v42 = vld [vmem:[%s2755_s7 + $0x48] sm:$0xff]  ;;  %v325_v43 = vld [vmem:[%s2755_s7 + $0xc0] sm:$0xff]  ;;  %v373_v6 = vsub.s32 1, %v368_v3  ;;  %p2472_p12 = pnand %p2471_p6, %p3697_p9  ;;  %s2474_s13 = sshll.u32 %s2550_s20, 4  ;;  %s2475_s13 = int_to_ptr.vmem [resolvable:$false] %s2474_s13 }
  0x75   : > { %463 = vmatprep.subr.bf16.mxu0 %v1964_v7  ;;  %1875 = vmatprep.subr.bf16.mxu1 %v1964_v7  ;;  %v344_v40 = vpack.c.bf16 %v324_v38, %v323_v37  ;;  %v326_v44 = vld [vmem:[%s2755_s7 + $0xc8] sm:$0xff]  ;;  %v337_v45 = vpack.c.bf16 %v310_v42, %v309_v41  ;;  %v311_v47 = vld [vmem:[%s2755_s7 + $0x50] sm:$0xff]  ;;  %v312_v48 = vld [vmem:[%s2755_s7 + $0x58] sm:$0xff]  ;;  %p2477_p0 = scmp.lt.s32.totalorder %s3621_s8, %s2475_s13 }
  0x76   : > { %v345_v46 = vpack.c.bf16 %v326_v44, %v325_v43  ;;  %v327_v49 = vld [vmem:[%s2755_s7 + $0xd0] sm:$0xff]  ;;  %v328_v50 = vld [vmem:[%s2755_s7 + $0xd8] sm:$0xff]  ;;  %v338_v51 = vpack.c.bf16 %v312_v48, %v311_v47  ;;  %v313_v53 = vld [vmem:[%s2755_s7 + $0x60] sm:$0xff]  ;;  %p2473_p13 = pneg %p2472_p12 }
  0x77   : > { %v346_v52 = vpack.c.bf16 %v328_v50, %v327_v49  ;;  %v314_v54 = vld [vmem:[%s2755_s7 + $0x68] sm:$0xff]  ;;  %v329_v55 = vld [vmem:[%s2755_s7 + $0xe0] sm:$0xff]  ;;  %v315_v59 = vld [vmem:[%s2755_s7 + $0x70] sm:$0xff] }
  0x78   : > { %464 = vmatpush1.bf16.msra.mxu0 %v1966_v8  ;;  %1883 = vmatpush1.bf16.msra.mxu1 %v1966_v8  ;;  %v330_v56 = vld [vmem:[%s2755_s7 + $0xe8] sm:$0xff]  ;;  %v339_v57 = vpack.c.bf16 %v314_v54, %v313_v53  ;;  %v316_v60 = vld [vmem:[%s2755_s7 + $0x78] sm:$0xff]  ;;  %v331_v61 = vld [vmem:[%s2755_s7 + $0xf0] sm:$0xff] }
  0x79   : > { %465 = vmatprep.subr.bf16.mxu0 %v1967_v9  ;;  %1876 = vmatprep.subr.bf16.mxu1 %v1967_v9  ;;  %v347_v58 = vpack.c.bf16 %v330_v56, %v329_v55  ;;  %v332_v62 = vld [vmem:[%s2755_s7 + $0xf8] sm:$0xff]  ;;  %v340_v63 = vpack.c.bf16 %v316_v60, %v315_v59  ;;  %v365_v5 = vld [vmem:[%s3668_s3] sm:$0x3] }
  0x7a   : > { %v348_v1 = vpack.c.bf16 %v332_v62, %v331_v61  ;;  %v2848_v7 = vrot.slane %v365_v5, %v369_v4  ;;  %v2850_v8 = vrot.slane %v365_v5, %v373_v6 }
  0x7c   : > { %466 = vmatpush1.bf16.msra.mxu0 %v1969_v10  ;;  %1884 = vmatpush1.bf16.msra.mxu1 %v1969_v10 }
  0x7d   : > { %467 = vmatprep.subr.bf16.mxu0 %v1970_v11  ;;  %1877 = vmatprep.subr.bf16.mxu1 %v1970_v11 }
  0x80   : > { %468 = vmatpush1.bf16.msra.mxu0 %v1972_v12  ;;  %1885 = vmatpush1.bf16.msra.mxu1 %v1972_v12 }
  0x81   : > { %469 = vmatprep.subr.bf16.mxu0 %v1973_v13  ;;  %1878 = vmatprep.subr.bf16.mxu1 %v1973_v13 }
  0x84   : > { %470 = vmatpush1.bf16.msra.mxu0 %v1975_v14  ;;  %1886 = vmatpush1.bf16.msra.mxu1 %v1975_v14 }
  0x85   : > { %471 = vmatprep.subr.bf16.mxu0 %v1976_v15  ;;  %1879 = vmatprep.subr.bf16.mxu1 %v1976_v15 }
  0x88   : > { %472 = vmatpush1.bf16.msra.mxu0 %v1978_v16  ;;  %1887 = vmatpush1.bf16.msra.mxu1 %v1978_v16 }
  0x8b   : > { %490 = vmatmul.mubr.bf16.vlgmr.msra.gmra.mxu0 %v333_v21  ;;  %570 = vmatmul.mubr.bf16.vlgmr.msra.gmra.mxu1 %v341_v22 }
  0x8c   : > { %499 = vmatprep.mubr.bf16.mxu0 %v2549_v0  ;;  %579 = vmatprep.mubr.bf16.mxu1 %v2549_v0 }
  0x93   : > { %500 = vmatmul.mubr.bf16.gmra.mxu0 %v334_v27  ;;  %580 = vmatmul.mubr.bf16.gmra.mxu1 %v342_v28 }
  0x94   : > { %509 = vmatprep.mubr.bf16.mxu0 %v2549_v0  ;;  %589 = vmatprep.mubr.bf16.mxu1 %v2549_v0 }
  0x9b   : > { %510 = vmatmul.mubr.bf16.gmra.mxu0 %v335_v33  ;;  %590 = vmatmul.mubr.bf16.gmra.mxu1 %v343_v34 }
  0x9c   : > { %519 = vmatprep.mubr.bf16.mxu0 %v2549_v0  ;;  %599 = vmatprep.mubr.bf16.mxu1 %v2549_v0 }
  0xa3   : > { %520 = vmatmul.mubr.bf16.gmra.mxu0 %v336_v39  ;;  %600 = vmatmul.mubr.bf16.gmra.mxu1 %v344_v40 }
  0xa4   : > { %529 = vmatprep.mubr.bf16.mxu0 %v2549_v0  ;;  %609 = vmatprep.mubr.bf16.mxu1 %v2549_v0 }
  0xab   : > { %530 = vmatmul.mubr.bf16.gmra.mxu0 %v337_v45  ;;  %610 = vmatmul.mubr.bf16.gmra.mxu1 %v345_v46 }
  0xac   : > { %539 = vmatprep.mubr.bf16.mxu0 %v2549_v0  ;;  %619 = vmatprep.mubr.bf16.mxu1 %v2549_v0 }
  0xb3   : > { %540 = vmatmul.mubr.bf16.gmra.mxu0 %v338_v51  ;;  %620 = vmatmul.mubr.bf16.gmra.mxu1 %v346_v52 }
  0xb4   : > { %549 = vmatprep.mubr.bf16.mxu0 %v2549_v0  ;;  %629 = vmatprep.mubr.bf16.mxu1 %v2549_v0 }
  0xbb   : > { %550 = vmatmul.mubr.bf16.gmra.mxu0 %v339_v57  ;;  %630 = vmatmul.mubr.bf16.gmra.mxu1 %v347_v58 }
  0xbc   : > { %559 = vmatprep.mubr.bf16.mxu0 %v2549_v0  ;;  %639 = vmatprep.mubr.bf16.mxu1 %v2549_v0 }
  0xc3   : > { %560 = vmatmul.mubr.bf16.gmra.mxu0 %v340_v63  ;;  %640 = vmatmul.mubr.bf16.gmra.mxu1 %v348_v1 }
 0x14b   : > { %v491_v0 = vpop.f32.mrf.mxu0  ;;  %v571_v9 = vpop.f32.mrf.mxu1 }
 0x14c   : > { %v492_v10 = vadd.f32 %v491_v0, %v2848_v7  ;;  %v572_v11 = vadd.f32 %v571_v9, %v2848_v7 }
 0x14d   : > { %v493_v12 = vpop.f32.mrf.mxu0  ;;  %v573_v13 = vpop.f32.mrf.mxu1 }
 0x14e   : > { %v1799_v14 = vmul.f32 -1.442695, %v492_v10  ;;  %v1831_v15 = vmul.f32 -1.442695, %v572_v11  ;;  %v494_v16 = vadd.f32 %v493_v12, %v2850_v8  ;;  %v574_v21 = vadd.f32 %v573_v13, %v2850_v8 }
 0x14f   : > { %v495_v22 = vpop.f32.mrf.mxu0  ;;  %v575_v27 = vpop.f32.mrf.mxu1 }
 0x150   : > { %1979 = vpow2.f32 %v1799_v14  ;;  %v1800_v28 = vmul.f32 -1.442695, %v494_v16  ;;  %v1832_v29 = vmul.f32 -1.442695, %v574_v21  ;;  %v496_v30 = vadd.f32 %v495_v22, %v2848_v7 }
 0x151   : > { %1981 = vpow2.f32 %v1831_v15  ;;  %v576_v31 = vadd.f32 %v575_v27, %v2848_v7  ;;  %v497_v32 = vpop.f32.mrf.mxu0  ;;  %v577_v33 = vpop.f32.mrf.mxu1 }
 0x152   : > { %1983 = vpow2.f32 %v1800_v28  ;;  %v1801_v34 = vmul.f32 -1.442695, %v496_v30  ;;  %v498_v35 = vadd.f32 %v497_v32, %v2850_v8  ;;  %v578_v36 = vadd.f32 %v577_v33, %v2850_v8 }
 0x153   : > { %1985 = vpow2.f32 %v1832_v29  ;;  %v1833_v37 = vmul.f32 -1.442695, %v576_v31  ;;  %v501_v38 = vpop.f32.mrf.mxu0  ;;  %v581_v39 = vpop.f32.mrf.mxu1 }
 0x154   : > { %1987 = vpow2.f32 %v1801_v34  ;;  %v1802_v40 = vmul.f32 -1.442695, %v498_v35  ;;  %v502_v41 = vadd.f32 %v501_v38, %v2848_v7  ;;  %v582_v42 = vadd.f32 %v581_v39, %v2848_v7 }
 0x155   : > { %1989 = vpow2.f32 %v1833_v37  ;;  %v503_v43 = vpop.f32.mrf.mxu0  ;;  %v583_v44 = vpop.f32.mrf.mxu1  ;;  %v1834_v45 = vmul.f32 -1.442695, %v578_v36 }
 0x156   : > { %v1803_v46 = vmul.f32 -1.442695, %v502_v41  ;;  %v504_v47 = vadd.f32 %v503_v43, %v2850_v8  ;;  %v584_v48 = vadd.f32 %v583_v44, %v2850_v8  ;;  %1991 = vpow2.f32 %v1802_v40 }
 0x157   : > { %v1835_v49 = vmul.f32 -1.442695, %v582_v42  ;;  %v505_v50 = vpop.f32.mrf.mxu0  ;;  %v585_v51 = vpop.f32.mrf.mxu1  ;;  %v2873_v42 = vld [vmem:[%s3669_s4] ss:$0 sm:$0xff] }
 0x158   : > { %1993 = vpow2.f32 %v1803_v46  ;;  %v1804_v52 = vmul.f32 -1.442695, %v504_v47  ;;  %v506_v53 = vadd.f32 %v505_v50, %v2848_v7  ;;  %v586_v54 = vadd.f32 %v585_v51, %v2848_v7 }
 0x159   : > { %1995 = vpow2.f32 %v1835_v49  ;;  %v507_v55 = vpop.f32.mrf.mxu0  ;;  %v587_v56 = vpop.f32.mrf.mxu1  ;;  %v1836_v57 = vmul.f32 -1.442695, %v584_v48 }
 0x15a   : > { %1997 = vpow2.f32 %v1834_v45  ;;  %v1805_v58 = vmul.f32 -1.442695, %v506_v53  ;;  %v508_v59 = vadd.f32 %v507_v55, %v2850_v8  ;;  %v1837_v60 = vmul.f32 -1.442695, %v586_v54 }
 0x15b   : > { %1999 = vpow2.f32 %v1804_v52  ;;  %v588_v61 = vadd.f32 %v587_v56, %v2850_v8  ;;  %v511_v9 = vpop.f32.mrf.mxu0  ;;  %v591_v15 = vpop.f32.mrf.mxu1 }
 0x15c   : > { %2001 = vpow2.f32 %v1805_v58  ;;  %v1806_v62 = vmul.f32 -1.442695, %v508_v59  ;;  %v512_v33 = vadd.f32 %v511_v9, %v2848_v7  ;;  %v592_v36 = vadd.f32 %v591_v15, %v2848_v7 }
 0x15d   : > { %v1980_v63 = vpop.eup %1979  ;;  %2003 = vpow2.f32 %v1837_v60  ;;  %v1838_v5 = vmul.f32 -1.442695, %v588_v61  ;;  %v513_v21 = vpop.f32.mrf.mxu0 }
 0x15e   : > { %v1982_v1 = vpop.eup %1981  ;;  %v842_v2 = vadd.f32 1.0, %v1980_v63  ;;  %2005 = vpow2.f32 %v1836_v57  ;;  %v593_v34 = vpop.f32.mrf.mxu1  ;;  %v1807_v46 = vmul.f32 -1.442695, %v512_v33  ;;  %v1839_v49 = vmul.f32 -1.442695, %v592_v36 }
 0x15f   : > { %v1984_v3 = vpop.eup %1983  ;;  %v874_v4 = vadd.f32 1.0, %v1982_v1  ;;  %2007 = vpow2.f32 %v1806_v62  ;;  %v515_v37 = vpop.f32.mrf.mxu0  ;;  %v514_v61 = vadd.f32 %v513_v21, %v2850_v8 }
 0x160   : > { %v1986_v6 = vpop.eup %1985  ;;  %2009 = vrcp.f32 %v842_v2  ;;  %v843_v12 = vadd.f32 1.0, %v1984_v3  ;;  %v595_v47 = vpop.f32.mrf.mxu1 }
 0x161   : > { %v1988_v0 = vpop.eup %1987  ;;  %2011 = vrcp.f32 %v874_v4  ;;  %v875_v27 = vadd.f32 1.0, %v1986_v6  ;;  %v517_v50 = vpop.f32.mrf.mxu0  ;;  %v594_v6 = vadd.f32 %v593_v34, %v2850_v8 }
 0x162   : > { %v1990_v10 = vpop.eup %1989  ;;  %v844_v11 = vadd.f32 1.0, %v1988_v0  ;;  %2013 = vpow2.f32 %v1838_v5  ;;  %v597_v57 = vpop.f32.mrf.mxu1 }
 0x163   : > { %v876_v13 = vadd.f32 1.0, %v1990_v10  ;;  %v1992_v14 = vpop.eup %1991  ;;  %v521_v62 = vpop.f32.mrf.mxu0 }
 0x164   : > { %2015 = vrcp.f32 %v844_v11  ;;  %v845_v30 = vadd.f32 1.0, %v1992_v14  ;;  %v601_v0 = vpop.f32.mrf.mxu1  ;;  %v1808_v11 = vmul.f32 -1.442695, %v514_v61 }
 0x165   : > { %v1994_v16 = vpop.eup %1993  ;;  %2017 = vrcp.f32 %v876_v13  ;;  %v523_v13 = vpop.f32.mrf.mxu0 }
 0x166   : > { %v1996_v22 = vpop.eup %1995  ;;  %v846_v28 = vadd.f32 1.0, %v1994_v16  ;;  %2019 = vrcp.f32 %v843_v12  ;;  %v516_v12 = vadd.f32 %v515_v37, %v2848_v7 }
 0x167   : > { %v1998_v29 = vpop.eup %1997  ;;  %v878_v31 = vadd.f32 1.0, %v1996_v22  ;;  %v596_v22 = vadd.f32 %v595_v47, %v2848_v7 }
 0x168   : > { %v2000_v32 = vpop.eup %1999  ;;  %2021 = vrcp.f32 %v846_v28  ;;  %v877_v39 = vadd.f32 1.0, %v1998_v29  ;;  %v1840_v29 = vmul.f32 -1.442695, %v594_v6  ;;  %v1809_v34 = vmul.f32 -1.442695, %v516_v12 }
 0x169   : > { %v2002_v35 = vpop.eup %2001  ;;  %2023 = vrcp.f32 %v878_v31  ;;  %v847_v43 = vadd.f32 1.0, %v2000_v32  ;;  %v603_v31 = vpop.f32.mrf.mxu1 }
 0x16a   : > { %v2004_v38 = vpop.eup %2003  ;;  %2025 = vrcp.f32 %v875_v27  ;;  %v848_v40 = vadd.f32 1.0, %v2002_v35  ;;  %v525_v35 = vpop.f32.mrf.mxu0 }
 0x16b   : > { %v2006_v41 = vpop.eup %2005  ;;  %2027 = vrcp.f32 %v845_v30  ;;  %v880_v44 = vadd.f32 1.0, %v2004_v38  ;;  %v518_v30 = vadd.f32 %v517_v50, %v2850_v8  ;;  %v602_v50 = vadd.f32 %v601_v0, %v2848_v7 }
 0x16c   : > { %v2008_v45 = vpop.eup %2007  ;;  %2029 = vrcp.f32 %v848_v40  ;;  %v879_v56 = vadd.f32 1.0, %v2006_v41  ;;  %v1841_v40 = vmul.f32 -1.442695, %v596_v22 }
 0x16d   : > { %v2010_v48 = vpop.eup %2009  ;;  %2031 = vrcp.f32 %v880_v44  ;;  %v849_v60 = vadd.f32 1.0, %v2008_v45  ;;  %v1810_v44 = vmul.f32 -1.442695, %v518_v30  ;;  %v598_v45 = vadd.f32 %v597_v57, %v2850_v8 }
 0x16e   : > { %v2012_v51 = vpop.eup %2011  ;;  %v1041_v52 = vmul.f32 %v2010_v48, %v2873_v42  ;;  %2033 = vrcp.f32 %v877_v39 }
 0x16f   : > { %v1057_v53 = vmul.f32 %v2012_v51, %v2873_v42  ;;  %2035 = vrcp.f32 %v847_v43  ;;  %v2014_v54 = vpop.eup %2013  ;;  %v527_v51 = vpop.f32.mrf.mxu0 }
 0x170   : > { %v1073_v55 = vmul.f32 1.442695, %v1041_v52  ;;  %2037 = vpow2.f32 %v1807_v46  ;;  %v881_v5 = vadd.f32 1.0, %v2014_v54  ;;  %v605_v46 = vpop.f32.mrf.mxu1  ;;  %v524_v54 = vadd.f32 %v523_v13, %v2850_v8 }
 0x171   : > { %v2016_v58 = vpop.eup %2015  ;;  %v1105_v59 = vmul.f32 1.442695, %v1057_v53  ;;  %2039 = vpow2.f32 %v1839_v49  ;;  %v522_v49 = vadd.f32 %v521_v62, %v2848_v7  ;;  %v531_v6 = vpop.f32.mrf.mxu0 }
 0x172   : > { %v2018_v63 = vpop.eup %2017  ;;  %2041 = vpow2.f32 %v1073_v55  ;;  %v1042_v1 = vmul.f32 %v2016_v58, %v2873_v42  ;;  %v604_v55 = vadd.f32 %v603_v31, %v2850_v8  ;;  %v526_v58 = vadd.f32 %v525_v35, %v2848_v7 }
 0x173   : > { %2043 = vpow2.f32 %v1105_v59  ;;  %v1058_v2 = vmul.f32 %v2018_v63, %v2873_v42  ;;  %v2880_v3 = vpop.eup %2019  ;;  %v606_v59 = vadd.f32 %v605_v46, %v2848_v7  ;;  %v528_v63 = vadd.f32 %v527_v51, %v2850_v8 }
 0x174   : > { %v1075_v4 = vmul.f32 1.442695, %v1042_v1  ;;  %2045 = vrcp.f32 %v879_v56  ;;  %v2910_v12 = vmul.f32 -1.442695, %v524_v54  ;;  %v2928_v30 = vadd.f32 %v531_v6, %v2848_v7 }
 0x175   : > { %v2022_v9 = vpop.eup %2021  ;;  %v1107_v10 = vmul.f32 1.442695, %v1058_v2  ;;  %2047 = vrcp.f32 %v849_v60 }
 0x176   : > { %v2024_v14 = vpop.eup %2023  ;;  %2049 = vpow2.f32 %v1075_v4  ;;  %v1043_v15 = vmul.f32 %v2022_v9, %v2873_v42 }
 0x177   : > { %v2885_v16 = vpop.eup %2025  ;;  %2051 = vpow2.f32 %v1107_v10  ;;  %v1059_v21 = vmul.f32 %v2024_v14, %v2873_v42  ;;  %v1811_v10 = vmul.f32 -1.442695, %v522_v49 }
 0x178   : > { %v2889_v27 = vpop.eup %2027  ;;  %v1077_v28 = vmul.f32 1.442695, %v1043_v15  ;;  %2053 = vrcp.f32 %v881_v5  ;;  %v1842_v5 = vmul.f32 -1.442695, %v598_v45  ;;  %v2916_v15 = vmul.f32 -1.442695, %v604_v55 }
 0x179   : > { %v2030_v32 = vpop.eup %2029  ;;  %v1109_v33 = vmul.f32 1.442695, %v1059_v21  ;;  %2055 = vpow2.f32 %v1808_v11  ;;  %v1843_v11 = vmul.f32 -1.442695, %v602_v50  ;;  %v2918_v21 = vmul.f32 -1.442695, %v526_v58 }
 0x17a   : > { %v2032_v36 = vpop.eup %2031  ;;  %2057 = vpow2.f32 %v1077_v28  ;;  %v1044_v37 = vmul.f32 %v2030_v32, %v2873_v42  ;;  %v2923_v28 = vmul.f32 -1.442695, %v606_v59  ;;  %v2932_v32 = vmul.f32 %v2880_v3, %v2776_v17 }
 0x17b   : > { %v2893_v38 = vpop.eup %2033  ;;  %2059 = vpow2.f32 %v1109_v33  ;;  %v1060_v39 = vmul.f32 %v2032_v36, %v2873_v42  ;;  %v2937_v33 = vmul.f32 %v2885_v16, %v2782_v19  ;;  %v1457_v16 = vld [vmem:[%s2763_s2] sm:$0xff] }
 0x17c   : > { %v2036_v41 = vpop.eup %2035  ;;  %v1079_v43 = vmul.f32 1.442695, %v1044_v37  ;;  %2061 = vpow2.f32 %v1840_v29  ;;  %v2925_v29 = vmul.f32 -1.442695, %v528_v63 }
 0x17d   : > { %v2038_v47 = vpop.eup %2037  ;;  %v1111_v48 = vmul.f32 1.442695, %v1060_v39  ;;  %2063 = vpow2.f32 %v1809_v34  ;;  %v2941_v34 = vmul.f32 %v2889_v27, %v2779_v18  ;;  %v2952_v19 = vmul.f32 %v2036_v41, %v2792_v23  ;;  %v1473_v27 = vld [vmem:[%s2763_s2 + $0x80] sm:$0xff] }
 0x17e   : > { %v2040_v52 = vpop.eup %2039  ;;  %2065 = vpow2.f32 %v1079_v43  ;;  %v850_v53 = vadd.f32 1.0, %v2038_v47 }
 0x17f   : > { %v2901_v56 = vpop.eup %2041  ;;  %2067 = vpow2.f32 %v1111_v48  ;;  %v882_v57 = vadd.f32 1.0, %v2040_v52 }
 0x180   : > { %v2044_v60 = vpop.eup %2043  ;;  %v1137_v61 = vsub.f32 1.0, %v2901_v56  ;;  %v1169_v62 = vadd.f32 1.0, %v2901_v56  ;;  %2069 = vrcp.f32 %v850_v53  ;;  %v2973_v51 = vmul.f32 %v2901_v56, %v1457_v16  ;;  %v1474_v56 = vld [vmem:[%s2763_s2 + $0x88] sm:$0xff] }
 0x181   : > { %v2046_v1 = vpop.eup %2045  ;;  %v1153_v2 = vsub.f32 1.0, %v2044_v60  ;;  %v1185_v4 = vadd.f32 1.0, %v2044_v60  ;;  %2071 = vrcp.f32 %v882_v57  ;;  %v2975_v52 = vmul.f32 %v2044_v60, %v1473_v27 }
 0x182   : > { %v2048_v0 = vpop.eup %2047  ;;  %v2908_v9 = vmul.f32 %v1169_v62, %v1137_v61  ;;  %2073 = vpow2.f32 %v1841_v40  ;;  %v2949_v40 = vmul.f32 %v2893_v38, %v2785_v20  ;;  %v2962_v23 = vmul.f32 %v2046_v1, %v2800_v25  ;;  %v1458_v25 = vld [vmem:[%s2763_s2 + $0x8] sm:$0xff]  ;;  %v1459_v1 = vld [vmem:[%s2763_s2 + $0x10] sm:$0xff] }
 0x183   : > { %v2912_v13 = vpop.eup %2049  ;;  %v2914_v14 = vmul.f32 %v1185_v4, %v1153_v2  ;;  %v2965_v38 = vmul.f32 %v2048_v0, %v2797_v24 }
 0x184   : > { %v2920_v22 = vpop.eup %2051  ;;  %2075 = vrsqrt.f32 %v2908_v9  ;;  %v1138_v36 = vsub.f32 1.0, %v2912_v13  ;;  %v1170_v37 = vadd.f32 1.0, %v2912_v13  ;;  %vm1235_vm0 = vcmp.eq.f32.partialorder %v2908_v9, inf }
 0x185   : > { %v2054_v31 = vpop.eup %2053  ;;  %2077 = vrsqrt.f32 %v2914_v14  ;;  %v1154_v39 = vsub.f32 1.0, %v2920_v22  ;;  %v1186_v3 = vadd.f32 1.0, %v2920_v22  ;;  %vm1237_vm1 = vcmp.eq.f32.partialorder %v2908_v9, 0.0 }
 0x186   : > { %v2056_v35 = vpop.eup %2055  ;;  %2079 = vpow2.f32 %v1810_v44  ;;  %v2956_v43 = vmul.f32 %v1170_v37, %v1138_v36  ;;  %v2968_v41 = vmul.f32 %v2054_v31, %v2803_v26  ;;  %v1238_v63 = vand.u32 2147483648, %v2908_v9 }
 0x187   : > { %v2058_v17 = vpop.eup %2057  ;;  %2081 = vpow2.f32 %v1842_v5  ;;  %v2958_v47 = vmul.f32 %v1186_v3, %v1154_v39  ;;  %v851_v53 = vadd.f32 1.0, %v2056_v35  ;;  %vm1347_vm2 = vcmp.eq.f32.partialorder %v2914_v14, inf  ;;  %v1475_v5 = vld [vmem:[%s2763_s2 + $0x90] sm:$0xff] }
 0x188   : > { %v2060_v18 = vpop.eup %2059  ;;  %v1139_v45 = vsub.f32 1.0, %v2058_v17  ;;  %v1171_v46 = vadd.f32 1.0, %v2058_v17  ;;  %2083 = vpow2.f32 %v1811_v10  ;;  %vm1349_vm3 = vcmp.eq.f32.partialorder %v2914_v14, 0.0 }
 0x189   : > { %v2062_v44 = vpop.eup %2061  ;;  %v1155_v48 = vsub.f32 1.0, %v2060_v18  ;;  %v1187_v49 = vadd.f32 1.0, %v2060_v18  ;;  %2085 = vpow2.f32 %v1843_v11  ;;  %v1350_v2 = vand.u32 2147483648, %v2914_v14 }
 0x18a   : > { %v2064_v20 = vpop.eup %2063  ;;  %2087 = vrsqrt.f32 %v2956_v43  ;;  %v2981_v55 = vmul.f32 %v1171_v46, %v1139_v45  ;;  %v2991_v61 = vadd.f32 1.0, %v2062_v44  ;;  %v3001_v4 = vmul.f32 %v2912_v13, %v1458_v25  ;;  %v1476_v44 = vld [vmem:[%s2763_s2 + $0x98] sm:$0xff] }
 0x18b   : > { %v2970_v50 = vpop.eup %2065  ;;  %2089 = vrsqrt.f32 %v2958_v47  ;;  %v2983_v24 = vmul.f32 %v1187_v49, %v1155_v48  ;;  %v3006_v0 = vmul.f32 %v2920_v22, %v1474_v56  ;;  %v3013_v36 = vmul.f32 %v2058_v17, %v1459_v1 }
 0x18c   : > { %v2978_v54 = vpop.eup %2067  ;;  %v1140_v26 = vsub.f32 1.0, %v2970_v50  ;;  %v1172_v57 = vadd.f32 1.0, %v2970_v50  ;;  %2091 = vrsqrt.f32 %v2981_v55  ;;  %v852_v13 = vadd.f32 1.0, %v2064_v20 }
 0x18d   : > { %v2070_v58 = vpop.eup %2069  ;;  %v1156_v59 = vsub.f32 1.0, %v2978_v54  ;;  %v1188_v60 = vadd.f32 1.0, %v2978_v54  ;;  %2093 = vrsqrt.f32 %v2983_v24  ;;  %vm1242_vm4 = vcmp.eq.f32.partialorder %v2956_v43, inf }
 0x18e   : > { %v2072_v62 = vpop.eup %2071  ;;  %v3008_v10 = vmul.f32 %v1172_v57, %v1140_v26  ;;  %v1045_v31 = vmul.f32 %v2070_v58, %v2873_v42  ;;  %2095 = vrcp.f32 %v851_v53  ;;  %v3018_v22 = vmul.f32 %v2060_v18, %v1475_v5  ;;  %v1460_v18 = vld [vmem:[%s2763_s2 + $0x18] sm:$0xff] }
 0x18f   : > { %v2074_v6 = vpop.eup %2073  ;;  %v3010_v11 = vmul.f32 %v1188_v60, %v1156_v59  ;;  %v1061_v37 = vmul.f32 %v2072_v62, %v2873_v42  ;;  %vm1244_vm5 = vcmp.eq.f32.partialorder %v2956_v43, 0.0  ;;  %v1245_v27 = vand.u32 2147483648, %v2956_v43 }
 0x190   : > { %2097 = vrsqrt.f32 %v3008_v10  ;;  %vm1354_vm6 = vcmp.eq.f32.partialorder %v2958_v47, inf  ;;  %vm1356_vm7 = vcmp.eq.f32.partialorder %v2958_v47, 0.0  ;;  %v1081_v48 = vmul.f32 1.442695, %v1045_v31 }
 0x191   : > { %v2076_v35 = vpop.eup %2075  ;;  %2099 = vrsqrt.f32 %v3010_v11  ;;  %v1113_v25 = vmul.f32 1.442695, %v1061_v37  ;;  %v884_v26 = vadd.f32 1.0, %v2074_v6  ;;  %v1357_v59 = vand.u32 2147483648, %v2958_v47 }
 0x192   : > { %v2078_v39 = vpop.eup %2077  ;;  %v1234_v3 = vmul.f32 %v2076_v35, %v2908_v9  ;;  %2101 = vpow2.f32 %v1081_v48  ;;  %v3047_v62 = vmul.f32 %v2970_v50, %v1460_v18  ;;  %vm1249_vm8 = vcmp.eq.f32.partialorder %v2981_v55, inf }
 0x193   : > { %v3021_v16 = vpop.eup %2079  ;;  %v1346_v17 = vmul.f32 %v2078_v39, %v2914_v14  ;;  %2103 = vpow2.f32 %v1113_v25  ;;  %vm1251_vm9 = vcmp.eq.f32.partialorder %v2981_v55, 0.0  ;;  %vm1361_vm10 = vcmp.eq.f32.partialorder %v2983_v24, inf }
 0x194   : > { %v3027_v45 = vpop.eup %2081  ;;  %v1236_v46 = vsel %vm1235_vm0, %v2908_v9, %v1234_v3  ;;  %2105 = vrcp.f32 %v852_v13  ;;  %vm1363_vm11 = vcmp.eq.f32.partialorder %v2983_v24, 0.0  ;;  %vm1256_vm12 = vcmp.eq.f32.partialorder %v3008_v10, inf }
 0x195   : > { %v2084_v49 = vpop.eup %2083  ;;  %v1239_v20 = vsel %vm1237_vm1, %v1238_v63, %v1236_v46  ;;  %v1348_v53 = vsel %vm1347_vm2, %v2914_v14, %v1346_v17  ;;  %v3050_v63 = vmul.f32 %v2978_v54, %v1476_v44  ;;  %2107 = vrcp.f32 %v884_v26 }
 0x196   : > { %v2086_v57 = vpop.eup %2085  ;;  %v1553_v58 = vmul.f32 %v2932_v32, %v1239_v20  ;;  %v1351_v56 = vsel %vm1349_vm3, %v1350_v2, %v1348_v53  ;;  %v854_v2 = vadd.f32 1.0, %v2084_v49  ;;  %v1364_v17 = vand.u32 2147483648, %v2983_v24 }
 0x197   : > { %v2088_v60 = vpop.eup %2087  ;;  %v1569_v9 = vmul.f32 %v2937_v33, %v1351_v56  ;;  %v886_v33 = vadd.f32 1.0, %v2086_v57  ;;  %vm1258_vm13 = vcmp.eq.f32.partialorder %v3008_v10, 0.0  ;;  %vm1368_vm14 = vcmp.eq.f32.partialorder %v3010_v11, inf }
 0x198   : > { %v2090_v1 = vpop.eup %2089  ;;  %v1585_v32 = vadd.f32 %v1553_v58, %v2973_v51  ;;  %v1241_v14 = vmul.f32 %v2088_v60, %v2956_v43  ;;  %v1252_v51 = vand.u32 2147483648, %v2981_v55  ;;  %2109 = vrcp.f32 %v854_v2 }
 0x199   : > { %v1601_v5 = vadd.f32 %v1569_v9, %v2975_v52  ;;  %v1353_v6 = vmul.f32 %v2090_v1, %v2958_v47  ;;  %v2092_v52 = vpop.eup %2091  ;;  %2111 = vrcp.f32 %v886_v33  ;;  %vm1370_vm15 = vcmp.eq.f32.partialorder %v3010_v11, 0.0  ;;  %v607_v9 = vpop.f32.mrf.mxu1 }
 0x19a   : > { %1617 = vst [vmem:[%s3057_s29] sm:$0xff] %v1585_v32  ;;  %v1243_v50 = vsel %vm1242_vm4, %v2956_v43, %v1241_v14  ;;  %v2094_v35 = vpop.eup %2093  ;;  %v1248_v39 = vmul.f32 %v2092_v52, %v2981_v55  ;;  %2113 = vrcp.f32 %v2991_v61  ;;  %v853_v60 = vadd.f32 1.0, %v3021_v16 }
 0x19b   : > { %1633 = vst [vmem:[%s3057_s29 + $0x80] sm:$0xff] %v1601_v5  ;;  %v1246_v54 = vsel %vm1244_vm5, %v1245_v27, %v1243_v50  ;;  %v1355_v31 = vsel %vm1354_vm6, %v2958_v47, %v1353_v6  ;;  %v1360_v3 = vmul.f32 %v2094_v35, %v2983_v24  ;;  %v3081_v27 = vpop.eup %2095  ;;  %2115 = vpow2.f32 %v2918_v21 }
 0x19c   : > { %v1554_v37 = vmul.f32 %v2941_v34, %v1246_v54  ;;  %v1358_v13 = vsel %vm1356_vm7, %v1357_v59, %v1355_v31  ;;  %v1250_v34 = vsel %vm1249_vm8, %v2981_v55, %v1248_v39  ;;  %2117 = vpow2.f32 %v2923_v28 }
 0x19d   : > { %v1570_v43 = vmul.f32 %v2949_v40, %v1358_v13  ;;  %v2098_v47 = vpop.eup %2097  ;;  %v1253_v18 = vsel %vm1251_vm9, %v1252_v51, %v1250_v34  ;;  %v1362_v44 = vsel %vm1361_vm10, %v2983_v24, %v1360_v3  ;;  %v1371_v24 = vand.u32 2147483648, %v3010_v11 }
 0x19e   : > { %v1586_v46 = vadd.f32 %v1554_v37, %v3001_v4  ;;  %v2100_v4 = vpop.eup %2099  ;;  %v1555_v48 = vmul.f32 %v2952_v19, %v1253_v18  ;;  %v1365_v49 = vsel %vm1363_vm11, %v1364_v17, %v1362_v44  ;;  %v1255_v61 = vmul.f32 %v2098_v47, %v3008_v10  ;;  %v1461_v18 = vld [vmem:[%s2763_s2 + $0x20] sm:$0xff] }
 0x19f   : > { %v1602_v40 = vadd.f32 %v1570_v43, %v3006_v0  ;;  %v1259_v0 = vand.u32 2147483648, %v3008_v10  ;;  %v1571_v55 = vmul.f32 %v2962_v23, %v1365_v49  ;;  %v1367_v20 = vmul.f32 %v2100_v4, %v3010_v11  ;;  %v3113_v25 = vpop.eup %2101  ;;  %v1477_v44 = vld [vmem:[%s2763_s2 + $0xa0] sm:$0xff] }
 0x1a0   : > { %1618 = vst [vmem:[%s3057_s29 + $0x8] sm:$0xff] %v1586_v46  ;;  %v1587_v53 = vadd.f32 %v1555_v48, %v3013_v36  ;;  %v1257_v19 = vsel %vm1256_vm12, %v3008_v10, %v1255_v61  ;;  %v3120_v36 = vpop.eup %2103  ;;  %v1141_v56 = vsub.f32 1.0, %v3113_v25  ;;  %v1173_v28 = vadd.f32 1.0, %v3113_v25  ;;  %v2363_v61 = vld [vmem:[%s2755_s7 + $0x20] sm:$0xff] }
 0x1a1   : > { %1634 = vst [vmem:[%s3057_s29 + $0x88] sm:$0xff] %v1602_v40  ;;  %v1603_v23 = vadd.f32 %v1571_v55, %v3018_v22  ;;  %v1260_v26 = vsel %vm1258_vm13, %v1259_v0, %v1257_v19  ;;  %v1369_v21 = vsel %vm1368_vm14, %v3010_v11, %v1367_v20  ;;  %v2106_v59 = vpop.eup %2105  ;;  %v1157_v22 = vsub.f32 1.0, %v3120_v36  ;;  %v2364_v55 = vld [vmem:[%s2755_s7 + $0xa0] sm:$0xff] }
 0x1a2   : > { %1619 = vst [vmem:[%s3057_s29 + $0x10] sm:$0xff] %v1587_v53  ;;  %v1556_v57 = vmul.f32 %v2965_v38, %v1260_v26  ;;  %v1372_v58 = vsel %vm1370_vm15, %v1371_v24, %v1369_v21  ;;  %v1189_v11 = vadd.f32 1.0, %v3120_v36  ;;  %v2108_v1 = vpop.eup %2107  ;;  %v3132_v32 = vmul.f32 %v1173_v28, %v1141_v56 }
 0x1a3   : > { %1635 = vst [vmem:[%s3057_s29 + $0x90] sm:$0xff] %v1603_v23  ;;  %v1572_v10 = vmul.f32 %v2968_v41, %v1372_v58  ;;  %v1046_v14 = vmul.f32 %v2106_v59, %v2873_v42  ;;  %2119 = vpow2.f32 %v2910_v12  ;;  %v1062_v5 = vmul.f32 %v2108_v1, %v2873_v42 }
 0x1a4   : > { %v1588_v38 = vadd.f32 %v1556_v57, %v3047_v62  ;;  %v3137_v41 = vmul.f32 %v1189_v11, %v1157_v22  ;;  %2121 = vpow2.f32 %v2916_v15  ;;  %v611_v62 = vpop.f32.mrf.mxu1  ;;  %v1815_v12 = vmul.f32 -1.442695, %v2928_v30 }
 0x1a5   : > { %v1604_v2 = vadd.f32 %v1572_v10, %v3050_v63  ;;  %2123 = vrsqrt.f32 %v3132_v32  ;;  %v2110_v16 = vpop.eup %2109  ;;  %v1083_v33 = vmul.f32 1.442695, %v1046_v14  ;;  %v1115_v50 = vmul.f32 1.442695, %v1062_v5  ;;  %v533_v63 = vpop.f32.mrf.mxu0 }
 0x1a6   : > { %1620 = vst [vmem:[%s3057_s29 + $0x18] sm:$0xff] %v1588_v38  ;;  %2125 = vrsqrt.f32 %v3137_v41  ;;  %v2112_v6 = vpop.eup %2111  ;;  %v1047_v52 = vmul.f32 %v2110_v16, %v2873_v42  ;;  %v608_v54 = vadd.f32 %v607_v9, %v2850_v8  ;;  %v612_v31 = vadd.f32 %v611_v62, %v2848_v7  ;;  %v3152_v30 = vpop.f32.mrf.mxu1 }
 0x1a7   : > { %1636 = vst [vmem:[%s3057_s29 + $0x98] sm:$0xff] %v1604_v2  ;;  %2127 = vrcp.f32 %v853_v60  ;;  %v2114_v51 = vpop.eup %2113  ;;  %v1063_v15 = vmul.f32 %v2112_v6, %v2873_v42  ;;  %v885_v35 = vadd.f32 1.0, %v3027_v45  ;;  %v535_v43 = vpop.f32.mrf.mxu0  ;;  %v534_v48 = vadd.f32 %v533_v63, %v2850_v8 }
 0x1a8   : > { %2129 = vpow2.f32 %v2925_v29  ;;  %v1085_v37 = vmul.f32 1.442695, %v1047_v52  ;;  %v2116_v39 = vpop.eup %2115  ;;  %v1846_v46 = vmul.f32 -1.442695, %v608_v54  ;;  %v1847_v34 = vmul.f32 -1.442695, %v612_v31  ;;  %v3155_v47 = vpop.f32.mrf.mxu1 }
 0x1a9   : > { %2131 = vpow2.f32 %v1083_v33  ;;  %v1117_v13 = vmul.f32 1.442695, %v1063_v15  ;;  %v2118_v3 = vpop.eup %2117  ;;  %v856_v29 = vadd.f32 1.0, %v2116_v39  ;;  %v536_v45 = vadd.f32 %v535_v43, %v2848_v7  ;;  %v537_v21 = vpop.f32.mrf.mxu0 }
 0x1aa   : > { %2133 = vpow2.f32 %v1115_v50  ;;  %v888_v17 = vadd.f32 1.0, %v2118_v3  ;;  %v1525_v0 = vmul.f32 %v2363_v61, %v3081_v27  ;;  %v1541_v20 = vmul.f32 %v2364_v55, %v2114_v51  ;;  %v3167_v57 = vpop.f32.mrf.mxu1 }
 0x1ab   : > { %2135 = vpow2.f32 %v1815_v12  ;;  %v1817_v53 = vmul.f32 -1.442695, %v536_v45  ;;  %vm1263_vm0 = vcmp.eq.f32.partialorder %v3132_v32, inf  ;;  %v1493_v23 = vmul.f32 %v3113_v25, %v1461_v18  ;;  %v541_v2 = vpop.f32.mrf.mxu0 }
 0x1ac   : > { %2137 = vpow2.f32 %v1085_v37  ;;  %v1509_v26 = vmul.f32 %v3120_v36, %v1477_v44  ;;  %vm1265_vm1 = vcmp.eq.f32.partialorder %v3132_v32, 0.0  ;;  %v1266_v27 = vand.u32 2147483648, %v3132_v32  ;;  %v621_v5 = vpop.f32.mrf.mxu1 }
 0x1ad   : > { %2139 = vpow2.f32 %v1117_v13  ;;  %vm1375_vm2 = vcmp.eq.f32.partialorder %v3137_v41, inf  ;;  %v1378_v25 = vand.u32 2147483648, %v3137_v41  ;;  %vm1377_vm3 = vcmp.eq.f32.partialorder %v3137_v41, 0.0  ;;  %v3199_v37 = vpop.f32.mrf.mxu0 }
 0x1ae   : > { %2141 = vrcp.f32 %v885_v35  ;;  %v1816_v63 = vmul.f32 -1.442695, %v534_v48  ;;  %v3201_v13 = vpop.f32.mrf.mxu1  ;;  %v616_v48 = vadd.f32 %v3155_v47, %v2848_v7 }
 0x1af   : > { %2143 = vrcp.f32 %v856_v29  ;;  %v545_v61 = vpop.f32.mrf.mxu0 }
 0x1b0   : > { %v2120_v40 = vpop.eup %2119  ;;  %2145 = vrcp.f32 %v888_v17 }
 0x1b1   : > { %v2122_v4 = vpop.eup %2121  ;;  %2147 = vpow2.f32 %v1846_v46  ;;  %v855_v28 = vadd.f32 1.0, %v2120_v40 }
 0x1b2   : > { %v2124_v49 = vpop.eup %2123  ;;  %2149 = vpow2.f32 %v1847_v34  ;;  %v887_v36 = vadd.f32 1.0, %v2122_v4  ;;  %v614_v4 = vadd.f32 %v3152_v30, %v2850_v8  ;;  %v622_v30 = vadd.f32 %v621_v5, %v2848_v7 }
 0x1b3   : > { %v2126_v19 = vpop.eup %2125  ;;  %v1262_v24 = vmul.f32 %v2124_v49, %v3132_v32  ;;  %2151 = vpow2.f32 %v1817_v53  ;;  %v538_v49 = vadd.f32 %v537_v21, %v2850_v8 }
 0x1b4   : > { %v3169_v58 = vpop.eup %2127  ;;  %v1374_v56 = vmul.f32 %v2126_v19, %v3137_v41  ;;  %2153 = vrcp.f32 %v855_v28  ;;  %v1478_v28 = vld [vmem:[%s2763_s2 + $0xa8] sm:$0xff] }
 0x1b5   : > { %v2130_v59 = vpop.eup %2129  ;;  %v1264_v10 = vsel %vm1263_vm0, %v3132_v32, %v1262_v24  ;;  %2155 = vrcp.f32 %v887_v36  ;;  %v542_v24 = vadd.f32 %v541_v2, %v2848_v7 }
 0x1b6   : > { %v3177_v22 = vpop.eup %2131  ;;  %v1267_v11 = vsel %vm1265_vm1, %v1266_v27, %v1264_v10  ;;  %v1376_v60 = vsel %vm1375_vm2, %v3137_v41, %v1374_v56  ;;  %v857_v43 = vadd.f32 1.0, %v2130_v59  ;;  %v1848_v27 = vmul.f32 -1.442695, %v614_v4  ;;  %v1462_v56 = vld [vmem:[%s2763_s2 + $0x28] sm:$0xff] }
 0x1b7   : > { %v3181_v9 = vpop.eup %2133  ;;  %v1557_v1 = vmul.f32 %v1525_v0, %v1267_v11  ;;  %v1379_v38 = vsel %vm1377_vm3, %v1378_v25, %v1376_v60  ;;  %v1142_v14 = vsub.f32 1.0, %v3177_v22  ;;  %v1174_v32 = vadd.f32 1.0, %v3177_v22  ;;  %v625_v0 = vpop.f32.mrf.mxu1 }
 0x1b8   : > { %v2136_v16 = vpop.eup %2135  ;;  %v1573_v62 = vmul.f32 %v1541_v20, %v1379_v38  ;;  %v1158_v6 = vsub.f32 1.0, %v3181_v9  ;;  %v1190_v33 = vadd.f32 1.0, %v3181_v9  ;;  %v1849_v10 = vmul.f32 -1.442695, %v616_v48 }
 0x1b9   : > { %v3187_v41 = vpop.eup %2137  ;;  %v1589_v50 = vadd.f32 %v1557_v1, %v1493_v23  ;;  %v3189_v12 = vmul.f32 %v1174_v32, %v1142_v14  ;;  %v858_v34 = vadd.f32 1.0, %v2136_v16  ;;  %v546_v23 = vadd.f32 %v545_v61, %v2848_v7  ;;  %v2365_v14 = vld [vmem:[%s2755_s7 + $0x28] sm:$0xff] }
 0x1ba   : > { %v3191_v51 = vpop.eup %2139  ;;  %v1605_v52 = vadd.f32 %v1573_v62, %v1509_v26  ;;  %v3193_v15 = vmul.f32 %v1190_v33, %v1158_v6  ;;  %v1143_v54 = vsub.f32 1.0, %v3187_v41  ;;  %v1175_v31 = vadd.f32 1.0, %v3187_v41  ;;  %v2366_v62 = vld [vmem:[%s2755_s7 + $0xa8] sm:$0xff]  ;;  %v1463_v33 = vld [vmem:[%s2763_s2 + $0x30] sm:$0xff] }
 0x1bb   : > { %v2142_v35 = vpop.eup %2141  ;;  %1621 = vst [vmem:[%s3057_s29 + $0x20] sm:$0xff] %v1589_v50  ;;  %2157 = vrsqrt.f32 %v3189_v12  ;;  %v1159_v17 = vsub.f32 1.0, %v3191_v51  ;;  %v1191_v46 = vadd.f32 1.0, %v3191_v51  ;;  %v626_v26 = vadd.f32 %v625_v0, %v2848_v7 }
 0x1bc   : > { %v2144_v39 = vpop.eup %2143  ;;  %1637 = vst [vmem:[%s3057_s29 + $0xa0] sm:$0xff] %v1605_v52  ;;  %2159 = vrsqrt.f32 %v3193_v15  ;;  %v3205_v29 = vmul.f32 %v1175_v31, %v1143_v54  ;;  %v3228_v25 = vadd.f32 %v3167_v57, %v2850_v8  ;;  %v3230_v11 = vmul.f32 -1.442695, %v538_v49 }
 0x1bd   : > { %v2146_v3 = vpop.eup %2145  ;;  %v1048_v40 = vmul.f32 %v2144_v39, %v2873_v42  ;;  %2161 = vpow2.f32 %v1816_v63  ;;  %v3217_v55 = vmul.f32 %v1191_v46, %v1159_v17  ;;  %v1819_v60 = vmul.f32 -1.442695, %v542_v24  ;;  %v2367_v63 = vld [vmem:[%s2755_s7 + $0x30] sm:$0xff] }
 0x1be   : > { %v2148_v45 = vpop.eup %2147  ;;  %v1064_v18 = vmul.f32 %v2146_v3, %v2873_v42  ;;  %2163 = vrsqrt.f32 %v3205_v29  ;;  %v1851_v1 = vmul.f32 -1.442695, %v622_v30  ;;  %v1526_v32 = vmul.f32 %v2365_v14, %v3169_v58  ;;  %v1479_v58 = vld [vmem:[%s2763_s2 + $0xb0] sm:$0xff] }
 0x1bf   : > { %v2150_v44 = vpop.eup %2149  ;;  %v1087_v20 = vmul.f32 1.442695, %v1048_v40  ;;  %2165 = vrcp.f32 %v857_v43  ;;  %v889_v47 = vadd.f32 1.0, %v2148_v45  ;;  %v1821_v2 = vmul.f32 -1.442695, %v546_v23  ;;  %v2368_v46 = vld [vmem:[%s2755_s7 + $0xb0] sm:$0xff] }
 0x1c0   : > { %v1119_v53 = vmul.f32 1.442695, %v1064_v18  ;;  %2167 = vrcp.f32 %v858_v34  ;;  %v890_v19 = vadd.f32 1.0, %v2150_v44  ;;  %v2152_v21 = vpop.eup %2151  ;;  %v3234_v5 = vmul.f32 -1.442695, %v626_v26 }
 0x1c1   : > { %2169 = vrsqrt.f32 %v3217_v55  ;;  %v860_v59 = vadd.f32 1.0, %v2152_v21  ;;  %v2154_v36 = vpop.eup %2153  ;;  %v1494_v57 = vmul.f32 %v3177_v22, %v1462_v56  ;;  %v1510_v16 = vmul.f32 %v3181_v9, %v1478_v28 }
 0x1c2   : > { %2171 = vpow2.f32 %v1087_v20  ;;  %v2156_v38 = vpop.eup %2155  ;;  %v1542_v6 = vmul.f32 %v2366_v62, %v2142_v35  ;;  %vm1270_vm4 = vcmp.eq.f32.partialorder %v3189_v12, inf  ;;  %vm1272_vm5 = vcmp.eq.f32.partialorder %v3189_v12, 0.0 }
 0x1c3   : > { %2173 = vpow2.f32 %v1119_v53  ;;  %v1527_v52 = vmul.f32 %v2367_v63, %v2154_v36  ;;  %v1273_v22 = vand.u32 2147483648, %v3189_v12  ;;  %vm1382_vm6 = vcmp.eq.f32.partialorder %v3193_v15, inf }
 0x1c4   : > { %2175 = vrcp.f32 %v890_v19  ;;  %vm1384_vm7 = vcmp.eq.f32.partialorder %v3193_v15, 0.0  ;;  %v1385_v35 = vand.u32 2147483648, %v3193_v15  ;;  %v1495_v39 = vmul.f32 %v3187_v41, %v1463_v33  ;;  %v547_v33 = vpop.f32.mrf.mxu0 }
 0x1c5   : > { %2177 = vrcp.f32 %v889_v47  ;;  %vm1277_vm8 = vcmp.eq.f32.partialorder %v3205_v29, inf  ;;  %v1511_v17 = vmul.f32 %v3191_v51, %v1479_v58  ;;  %v1543_v34 = vmul.f32 %v2368_v46, %v2156_v38 }
 0x1c6   : > { %2179 = vpow2.f32 %v1848_v27  ;;  %vm1279_vm9 = vcmp.eq.f32.partialorder %v3205_v29, 0.0  ;;  %vm1389_vm10 = vcmp.eq.f32.partialorder %v3217_v55, inf  ;;  %vm1391_vm11 = vcmp.eq.f32.partialorder %v3217_v55, 0.0 }
 0x1c7   : > { %2181 = vrcp.f32 %v860_v59  ;;  %v1392_v21 = vand.u32 2147483648, %v3217_v55  ;;  %v1850_v63 = vmul.f32 -1.442695, %v3228_v25 }
 0x1c8   : > { %v2158_v50 = vpop.eup %2157  ;;  %2183 = vpow2.f32 %v1849_v10 }
 0x1c9   : > { %v2160_v54 = vpop.eup %2159  ;;  %v1269_v31 = vmul.f32 %v2158_v50, %v3189_v12  ;;  %2185 = vpow2.f32 %v1819_v60 }
 0x1ca   : > { %v1381_v9 = vmul.f32 %v2160_v54, %v3193_v15  ;;  %v2162_v43 = vpop.eup %2161  ;;  %2187 = vpow2.f32 %v1851_v1 }
 0x1cb   : > { %v1271_v3 = vsel %vm1270_vm4, %v3189_v12, %v1269_v31  ;;  %v2164_v45 = vpop.eup %2163  ;;  %v1280_v12 = vand.u32 2147483648, %v3205_v29  ;;  %v859_v61 = vadd.f32 1.0, %v2162_v43  ;;  %2189 = vpow2.f32 %v1821_v2 }
 0x1cc   : > { %v1274_v40 = vsel %vm1272_vm5, %v1273_v22, %v1271_v3  ;;  %v1383_v18 = vsel %vm1382_vm6, %v3193_v15, %v1381_v9  ;;  %v3261_v41 = vpop.eup %2165  ;;  %v1276_v48 = vmul.f32 %v2164_v45, %v3205_v29  ;;  %v624_v22 = vadd.f32 %v3201_v13, %v2850_v8  ;;  %v1464_v45 = vld [vmem:[%s2763_s2 + $0x38] sm:$0xff] }
 0x1cd   : > { %v1558_v44 = vmul.f32 %v1526_v32, %v1274_v40  ;;  %v1386_v4 = vsel %vm1384_vm7, %v1385_v35, %v1383_v18  ;;  %v2168_v51 = vpop.eup %2167  ;;  %2191 = vrcp.f32 %v859_v61  ;;  %v1480_v40 = vld [vmem:[%s2763_s2 + $0xb8] sm:$0xff] }
 0x1ce   : > { %v1574_v49 = vmul.f32 %v1542_v6, %v1386_v4  ;;  %v2170_v0 = vpop.eup %2169  ;;  %v1278_v53 = vsel %vm1277_vm8, %v3205_v29, %v1276_v48  ;;  %v1049_v15 = vmul.f32 %v2168_v51, %v2873_v42  ;;  %2193 = vpow2.f32 %v3230_v11  ;;  %v2371_v61 = vld [vmem:[%s2755_s7 + $0xb8] sm:$0xff] }
 0x1cf   : > { %v1590_v20 = vadd.f32 %v1558_v44, %v1494_v57  ;;  %v3273_v19 = vpop.eup %2171  ;;  %v1281_v30 = vsel %vm1279_vm9, %v1280_v12, %v1278_v53  ;;  %v1388_v47 = vmul.f32 %v2170_v0, %v3217_v55  ;;  %v3299_v57 = vld [vmem:[%s3669_s4] ss:$0 sm:$0xff]  ;;  %v544_v11 = vadd.f32 %v3199_v37, %v2850_v8 }
 0x1d0   : > { %v1606_v24 = vadd.f32 %v1574_v49, %v1510_v16  ;;  %v3278_v23 = vpop.eup %2173  ;;  %v1559_v26 = vmul.f32 %v1527_v52, %v1281_v30  ;;  %v1144_v27 = vsub.f32 1.0, %v3273_v19  ;;  %v1176_v56 = vadd.f32 1.0, %v3273_v19  ;;  %v2370_v49 = vld [vmem:[%s2755_s7 + $0x38] sm:$0xff] }
 0x1d1   : > { %1622 = vst [vmem:[%s3057_s29 + $0x28] sm:$0xff] %v1590_v20  ;;  %v2176_v42 = vpop.eup %2175  ;;  %v1390_v29 = vsel %vm1389_vm10, %v3217_v55, %v1388_v47  ;;  %v1160_v28 = vsub.f32 1.0, %v3278_v23  ;;  %v1192_v59 = vadd.f32 1.0, %v3278_v23  ;;  %v1089_v38 = vmul.f32 1.442695, %v1049_v15  ;;  %v627_v20 = vpop.f32.mrf.mxu1 }
 0x1d2   : > { %1638 = vst [vmem:[%s3057_s29 + $0xa8] sm:$0xff] %v1606_v24  ;;  %v2178_v10 = vpop.eup %2177  ;;  %v1591_v36 = vadd.f32 %v1559_v26, %v1495_v39  ;;  %v1393_v60 = vsel %vm1391_vm11, %v1392_v21, %v1390_v29  ;;  %v3292_v1 = vmul.f32 %v1176_v56, %v1144_v27  ;;  %v1065_v16 = vmul.f32 %v3299_v57, %v2176_v42  ;;  %v551_v39 = vpop.f32.mrf.mxu0 }
 0x1d3   : > { %v2180_v14 = vpop.eup %2179  ;;  %v1575_v32 = vmul.f32 %v1543_v34, %v1393_v60  ;;  %v3294_v2 = vmul.f32 %v1192_v59, %v1160_v28  ;;  %v1820_v3 = vmul.f32 -1.442695, %v544_v11  ;;  %v552_v46 = vadd.f32 %v551_v39, %v2848_v7  ;;  %v631_v59 = vpop.f32.mrf.mxu1 }
 0x1d4   : > { %v2182_v62 = vpop.eup %2181  ;;  %1623 = vst [vmem:[%s3057_s29 + $0x30] sm:$0xff] %v1591_v36  ;;  %2195 = vrsqrt.f32 %v3292_v1  ;;  %v1121_v50 = vmul.f32 1.442695, %v1065_v16  ;;  %v891_v31 = vadd.f32 1.0, %v2180_v14  ;;  %v1496_v51 = vmul.f32 %v3273_v19, %v1464_v45 }
 0x1d5   : > { %v2184_v55 = vpop.eup %2183  ;;  %v1607_v6 = vadd.f32 %v1575_v32, %v1511_v17  ;;  %2197 = vrsqrt.f32 %v3294_v2  ;;  %v1050_v52 = vmul.f32 %v3299_v57, %v2182_v62  ;;  %v548_v17 = vadd.f32 %v547_v33, %v2850_v8 }
 0x1d6   : > { %2199 = vpow2.f32 %v1089_v38  ;;  %v892_v58 = vadd.f32 1.0, %v2184_v55  ;;  %v2186_v54 = vpop.eup %2185  ;;  %v1823_v4 = vmul.f32 -1.442695, %v552_v46  ;;  %v1528_v12 = vmul.f32 %v2370_v49, %v3261_v41 }
 0x1d7   : > { %1639 = vst [vmem:[%s3057_s29 + $0xb0] sm:$0xff] %v1607_v6  ;;  %2201 = vpow2.f32 %v3234_v5  ;;  %v2188_v9 = vpop.eup %2187  ;;  %v1091_v35 = vmul.f32 1.442695, %v1050_v52  ;;  %v862_v25 = vadd.f32 1.0, %v2186_v54  ;;  %v1852_v5 = vmul.f32 -1.442695, %v624_v22  ;;  %v553_v22 = vpop.f32.mrf.mxu0 }
 0x1d8   : > { %2203 = vpow2.f32 %v1121_v50  ;;  %v894_v43 = vadd.f32 1.0, %v2188_v9  ;;  %v2190_v37 = vpop.eup %2189  ;;  %v1822_v44 = vmul.f32 -1.442695, %v548_v17  ;;  %v1544_v0 = vmul.f32 %v2371_v61, %v2178_v10  ;;  %v3355_v9 = vpop.f32.mrf.mxu1 }
 0x1d9   : > { %2205 = vrcp.f32 %v892_v58  ;;  %v864_v13 = vadd.f32 1.0, %v2190_v37  ;;  %vm1284_vm12 = vcmp.eq.f32.partialorder %v3292_v1, inf  ;;  %vm1286_vm13 = vcmp.eq.f32.partialorder %v3292_v1, 0.0  ;;  %v555_v45 = vpop.f32.mrf.mxu0 }
 0x1da   : > { %2207 = vpow2.f32 %v1850_v63  ;;  %v3316_v34 = vpop.eup %2191  ;;  %v1512_v24 = vmul.f32 %v3278_v23, %v1480_v40  ;;  %v1287_v19 = vand.u32 2147483648, %v3292_v1  ;;  %vm1396_vm14 = vcmp.eq.f32.partialorder %v3294_v2, inf  ;;  %v635_v40 = vpop.f32.mrf.mxu1 }
 0x1db   : > { %2209 = vpow2.f32 %v1091_v35  ;;  %v2194_v18 = vpop.eup %2193  ;;  %v1399_v27 = vand.u32 2147483648, %v3294_v2  ;;  %vm1398_vm15 = vcmp.eq.f32.partialorder %v3294_v2, 0.0  ;;  %v632_v6 = vadd.f32 %v631_v59, %v2848_v7 }
 0x1dc   : > { %2211 = vrcp.f32 %v891_v31  ;;  %v861_v41 = vadd.f32 1.0, %v2194_v18  ;;  %v628_v39 = vadd.f32 %v627_v20, %v2850_v8  ;;  %v636_v61 = vadd.f32 %v635_v40, %v2848_v7  ;;  %v2374_v40 = vld [vmem:[%s2755_s7 + $0x48] sm:$0xff] }
 0x1dd   : > { %2213 = vrcp.f32 %v862_v25 }
 0x1de   : > { %2215 = vrcp.f32 %v894_v43 }
 0x1df   : > { %2217 = vpow2.f32 %v1820_v3 }
 0x1e0   : > { %2219 = vpow2.f32 %v1852_v5  ;;  %v1855_v5 = vmul.f32 -1.442695, %v632_v6 }
 0x1e1   : > { %v2196_v48 = vpop.eup %2195  ;;  %2221 = vrcp.f32 %v864_v13 }
 0x1e2   : > { %v2198_v53 = vpop.eup %2197  ;;  %v1283_v15 = vmul.f32 %v2196_v48, %v3292_v1  ;;  %2223 = vpow2.f32 %v1823_v4 }
 0x1e3   : > { %v3328_v30 = vpop.eup %2199  ;;  %v1395_v47 = vmul.f32 %v2198_v53, %v3294_v2  ;;  %2225 = vrcp.f32 %v861_v41  ;;  %v3371_v41 = vadd.f32 %v553_v22, %v2850_v8 }
 0x1e4   : > { %v2202_v26 = vpop.eup %2201  ;;  %v1285_v21 = vsel %vm1284_vm12, %v3292_v1, %v1283_v15  ;;  %v1145_v56 = vsub.f32 1.0, %v3328_v30  ;;  %v1177_v42 = vadd.f32 1.0, %v3328_v30 }
 0x1e5   : > { %v3337_v29 = vpop.eup %2203  ;;  %v1288_v23 = vsel %vm1286_vm13, %v1287_v19, %v1285_v21  ;;  %v1397_v28 = vsel %vm1396_vm14, %v3294_v2, %v1395_v47  ;;  %v896_v58 = vadd.f32 1.0, %v2202_v26  ;;  %v1481_v47 = vld [vmem:[%s2763_s2 + $0xc0] sm:$0xff]  ;;  %v1857_v21 = vmul.f32 -1.442695, %v636_v61 }
 0x1e6   : > { %v2206_v10 = vpop.eup %2205  ;;  %v1560_v36 = vmul.f32 %v1528_v12, %v1288_v23  ;;  %v1400_v60 = vsel %vm1398_vm15, %v1399_v27, %v1397_v28  ;;  %v3341_v38 = vmul.f32 %v1177_v42, %v1145_v56  ;;  %v1161_v1 = vsub.f32 1.0, %v3337_v29  ;;  %v2372_v56 = vld [vmem:[%s2755_s7 + $0x40] sm:$0xff] }
 0x1e7   : > { %v2208_v14 = vpop.eup %2207  ;;  %v1576_v32 = vmul.f32 %v1544_v0, %v1400_v60  ;;  %v1193_v16 = vadd.f32 1.0, %v3337_v29  ;;  %v1066_v62 = vmul.f32 %v3299_v57, %v2206_v10  ;;  %v556_v12 = vadd.f32 %v555_v45, %v2848_v7  ;;  %v2373_v23 = vld [vmem:[%s2755_s7 + $0xc0] sm:$0xff] }
 0x1e8   : > { %v3346_v55 = vpop.eup %2209  ;;  %v1592_v2 = vadd.f32 %v1560_v36, %v1496_v51  ;;  %2227 = vrsqrt.f32 %v3341_v38  ;;  %v893_v25 = vadd.f32 1.0, %v2208_v14  ;;  %v1854_v51 = vmul.f32 -1.442695, %v628_v39 }
 0x1e9   : > { %v2212_v33 = vpop.eup %2211  ;;  %v1608_v50 = vadd.f32 %v1576_v32, %v1512_v24  ;;  %v3350_v63 = vmul.f32 %v1193_v16, %v1161_v1  ;;  %v1123_v52 = vmul.f32 1.442695, %v1066_v62  ;;  %v1146_v54 = vsub.f32 1.0, %v3346_v55  ;;  %v1465_v24 = vld [vmem:[%s2763_s2 + $0x40] sm:$0xff]  ;;  %v557_v62 = vpop.f32.mrf.mxu0 }
 0x1ea   : > { %v2214_v11 = vpop.eup %2213  ;;  %1624 = vst [vmem:[%s3057_s29 + $0x38] sm:$0xff] %v1592_v2  ;;  %v1178_v31 = vadd.f32 1.0, %v3346_v55  ;;  %2229 = vpow2.f32 %v1822_v44  ;;  %v1825_v26 = vmul.f32 -1.442695, %v556_v12  ;;  %v1529_v42 = vmul.f32 %v2372_v56, %v3316_v34 }
 0x1eb   : > { %v2216_v35 = vpop.eup %2215  ;;  %1640 = vst [vmem:[%s3057_s29 + $0xb8] sm:$0xff] %v1608_v50  ;;  %2231 = vrsqrt.f32 %v3350_v63  ;;  %v1051_v37 = vmul.f32 %v3299_v57, %v2214_v11  ;;  %v1545_v28 = vmul.f32 %v2373_v23, %v2212_v33  ;;  %vm1291_vm0 = vcmp.eq.f32.partialorder %v3341_v38, inf }
 0x1ec   : > { %v2218_v43 = vpop.eup %2217  ;;  %2233 = vpow2.f32 %v1123_v52  ;;  %v3360_v3 = vmul.f32 %v1178_v31, %v1146_v54  ;;  %v1067_v46 = vmul.f32 %v3299_v57, %v2216_v35  ;;  %v1294_v10 = vand.u32 2147483648, %v3341_v38 }
 0x1ed   : > { %v2220_v17 = vpop.eup %2219  ;;  %2235 = vrcp.f32 %v896_v58  ;;  %v1093_v18 = vmul.f32 1.442695, %v1051_v37  ;;  %v863_v48 = vadd.f32 1.0, %v2218_v43  ;;  %v1497_v36 = vmul.f32 %v3328_v30, %v1465_v24  ;;  %v3388_v30 = vpop.f32.mrf.mxu1 }
 0x1ee   : > { %v2222_v13 = vpop.eup %2221  ;;  %2237 = vrsqrt.f32 %v3360_v3  ;;  %v1125_v44 = vmul.f32 1.442695, %v1067_v46  ;;  %v895_v20 = vadd.f32 1.0, %v2220_v17  ;;  %vm1293_vm1 = vcmp.eq.f32.partialorder %v3341_v38, 0.0  ;;  %v561_v46 = vpop.f32.mrf.mxu0 }
 0x1ef   : > { %2239 = vrcp.f32 %v893_v25  ;;  %v1052_v4 = vmul.f32 %v3299_v57, %v2222_v13  ;;  %v2224_v0 = vpop.eup %2223  ;;  %vm1403_vm2 = vcmp.eq.f32.partialorder %v3350_v63, inf  ;;  %v1513_v34 = vmul.f32 %v3337_v29, %v1481_v47  ;;  %v1466_v25 = vld [vmem:[%s2763_s2 + $0x48] sm:$0xff]  ;;  %v641_v13 = vpop.f32.mrf.mxu1 }
 0x1f0   : > { %2241 = vpow2.f32 %v1855_v5  ;;  %v866_v53 = vadd.f32 1.0, %v2224_v0  ;;  %v2226_v15 = vpop.eup %2225  ;;  %vm1405_vm3 = vcmp.eq.f32.partialorder %v3350_v63, 0.0  ;;  %vm1298_vm4 = vcmp.eq.f32.partialorder %v3360_v3, inf }
 0x1f1   : > { %2243 = vpow2.f32 %v1093_v18  ;;  %v1095_v49 = vmul.f32 1.442695, %v1052_v4  ;;  %v1301_v5 = vand.u32 2147483648, %v3360_v3  ;;  %vm1300_vm5 = vcmp.eq.f32.partialorder %v3360_v3, 0.0 }
 0x1f2   : > { %2245 = vpow2.f32 %v1125_v44  ;;  %v1530_v18 = vmul.f32 %v2374_v40, %v2226_v15  ;;  %v3424_v15 = vpop.f32.mrf.mxu0  ;;  %v1824_v23 = vmul.f32 -1.442695, %v3371_v41  ;;  %v638_v41 = vadd.f32 %v3388_v30, %v2850_v8  ;;  %v1467_v40 = vld [vmem:[%s2763_s2 + $0x50] sm:$0xff] }
 0x1f3   : > { %2247 = vpow2.f32 %v1095_v49 }
 0x1f4   : > { %2249 = vrcp.f32 %v863_v48 }
 0x1f5   : > { %v2228_v19 = vpop.eup %2227  ;;  %2251 = vpow2.f32 %v1854_v51  ;;  %v1498_v51 = vmul.f32 %v3346_v55, %v1466_v25  ;;  %v3426_v55 = vpop.f32.mrf.mxu1 }
 0x1f6   : > { %v1290_v27 = vmul.f32 %v2228_v19, %v3341_v38  ;;  %2253 = vrcp.f32 %v866_v53 }
 0x1f7   : > { %v2230_v59 = vpop.eup %2229  ;;  %2255 = vrcp.f32 %v895_v20 }
 0x1f8   : > { %v2232_v60 = vpop.eup %2231  ;;  %v1292_v1 = vsel %vm1291_vm0, %v3341_v38, %v1290_v27  ;;  %2257 = vpow2.f32 %v1825_v26  ;;  %v1406_v38 = vand.u32 2147483648, %v3350_v63  ;;  %v865_v11 = vadd.f32 1.0, %v2230_v59 }
 0x1f9   : > { %v3384_v14 = vpop.eup %2233  ;;  %v1295_v32 = vsel %vm1293_vm1, %v1294_v10, %v1292_v1  ;;  %v1402_v16 = vmul.f32 %v2232_v60, %v3350_v63  ;;  %2259 = vpow2.f32 %v1857_v21  ;;  %v634_v59 = vadd.f32 %v3355_v9, %v2850_v8  ;;  %v645_v60 = vpop.f32.mrf.mxu1 }
 0x1fa   : > { %v2236_v2 = vpop.eup %2235  ;;  %v1561_v6 = vmul.f32 %v1529_v42, %v1295_v32  ;;  %v1162_v33 = vsub.f32 1.0, %v3384_v14  ;;  %v1194_v29 = vadd.f32 1.0, %v3384_v14  ;;  %v558_v10 = vadd.f32 %v557_v62, %v2850_v8 }
 0x1fb   : > { %v2238_v50 = vpop.eup %2237  ;;  %v1404_v52 = vsel %vm1403_vm2, %v3350_v63, %v1402_v16  ;;  %v1068_v58 = vmul.f32 %v3299_v57, %v2236_v2  ;;  %v562_v2 = vadd.f32 %v561_v46, %v2848_v7 }
 0x1fc   : > { %v3395_v54 = vpop.eup %2239  ;;  %v1593_v31 = vadd.f32 %v1561_v6, %v1497_v36  ;;  %v1407_v22 = vsel %vm1405_vm3, %v1406_v38, %v1404_v52  ;;  %v1297_v35 = vmul.f32 %v2238_v50, %v3360_v3  ;;  %v3401_v39 = vmul.f32 %v1194_v29, %v1162_v33  ;;  %v565_v36 = vpop.f32.mrf.mxu0 }
 0x1fd   : > { %v2242_v43 = vpop.eup %2241  ;;  %v1577_v37 = vmul.f32 %v1545_v28, %v1407_v22  ;;  %v1127_v17 = vmul.f32 1.442695, %v1068_v58  ;;  %v642_v6 = vadd.f32 %v641_v13, %v2848_v7  ;;  %v566_v38 = vadd.f32 %v565_v36, %v2848_v7 }
 0x1fe   : > { %v3405_v45 = vpop.eup %2243  ;;  %1625 = vst [vmem:[%s3057_s29 + $0x40] sm:$0xff] %v1593_v31  ;;  %v1299_v63 = vsel %vm1298_vm4, %v3360_v3, %v1297_v35  ;;  %2261 = vrsqrt.f32 %v3401_v39  ;;  %v898_v42 = vadd.f32 1.0, %v2242_v43  ;;  %v646_v33 = vadd.f32 %v645_v60, %v2848_v7 }
 0x1ff   : > { %v3412_v44 = vpop.eup %2245  ;;  %v1609_v4 = vadd.f32 %v1577_v37, %v1513_v34  ;;  %v1302_v48 = vsel %vm1300_vm5, %v1301_v5, %v1299_v63  ;;  %v1147_v49 = vsub.f32 1.0, %v3405_v45  ;;  %v1179_v0 = vadd.f32 1.0, %v3405_v45  ;;  %v1482_v5 = vld [vmem:[%s2763_s2 + $0xc8] sm:$0xff] }
 0x200   : > { %v3416_v12 = vpop.eup %2247  ;;  %v1562_v61 = vmul.f32 %v1530_v18, %v1302_v48  ;;  %v1163_v20 = vsub.f32 1.0, %v3412_v44  ;;  %2263 = vrcp.f32 %v865_v11  ;;  %v1195_v53 = vadd.f32 1.0, %v3412_v44  ;;  %v2376_v18 = vld [vmem:[%s2755_s7 + $0x50] sm:$0xff] }
 0x201   : > { %v3420_v3 = vpop.eup %2249  ;;  %1641 = vst [vmem:[%s3057_s29 + $0xc0] sm:$0xff] %v1609_v4  ;;  %2265 = vpow2.f32 %v1127_v17  ;;  %v3428_v47 = vmul.f32 %v1179_v0, %v1147_v49  ;;  %v1148_v26 = vsub.f32 1.0, %v3416_v12  ;;  %v1180_v21 = vadd.f32 1.0, %v3416_v12  ;;  %v2375_v17 = vld [vmem:[%s2755_s7 + $0xc8] sm:$0xff]  ;;  %v1483_v48 = vld [vmem:[%s2763_s2 + $0xd0] sm:$0xff] }
 0x202   : > { %v2252_v24 = vpop.eup %2251  ;;  %v1594_v19 = vadd.f32 %v1562_v61, %v1498_v51  ;;  %v3432_v56 = vmul.f32 %v1195_v53, %v1163_v20  ;;  %v1856_v52 = vmul.f32 -1.442695, %v634_v59  ;;  %v1826_v58 = vmul.f32 -1.442695, %v558_v10  ;;  %v2377_v20 = vld [vmem:[%s2755_s7 + $0xd0] sm:$0xff] }
 0x203   : > { %v2254_v27 = vpop.eup %2253  ;;  %2267 = vrsqrt.f32 %v3428_v47  ;;  %v3441_v34 = vmul.f32 %v1180_v21, %v1148_v26  ;;  %v897_v32 = vadd.f32 1.0, %v2252_v24  ;;  %v3451_v11 = vmul.f32 -1.442695, %v638_v41 }
 0x204   : > { %v2256_v28 = vpop.eup %2255  ;;  %1626 = vst [vmem:[%s3057_s29 + $0x48] sm:$0xff] %v1594_v19  ;;  %2269 = vrsqrt.f32 %v3432_v56  ;;  %v1053_v16 = vmul.f32 %v3299_v57, %v2254_v27  ;;  %v1827_v31 = vmul.f32 -1.442695, %v562_v2  ;;  %v1859_v22 = vmul.f32 -1.442695, %v642_v6 }
 0x205   : > { %v2258_v1 = vpop.eup %2257  ;;  %2271 = vrcp.f32 %v898_v42  ;;  %v1829_v7 = vmul.f32 -1.442695, %v566_v38  ;;  %v3454_v25 = vmul.f32 -1.442695, %v646_v33  ;;  %vm1410_vm6 = vcmp.eq.f32.partialorder %v3401_v39, inf  ;;  %v1468_v38 = vld [vmem:[%s2763_s2 + $0x58] sm:$0xff] }
 0x206   : > { %2273 = vpow2.f32 %v1824_v23  ;;  %v2260_v9 = vpop.eup %2259  ;;  %v868_v62 = vadd.f32 1.0, %v2258_v1  ;;  %v1097_v29 = vmul.f32 1.442695, %v1053_v16  ;;  %v1413_v37 = vand.u32 2147483648, %v3401_v39 }
 0x207   : > { %2275 = vrsqrt.f32 %v3441_v34  ;;  %v900_v50 = vadd.f32 1.0, %v2260_v9  ;;  %v1546_v46 = vmul.f32 %v2375_v17, %v3395_v54  ;;  %vm1412_vm7 = vcmp.eq.f32.partialorder %v3401_v39, 0.0 }
 0x208   : > { %2277 = vrcp.f32 %v897_v32  ;;  %v1531_v4 = vmul.f32 %v2376_v18, %v3420_v3  ;;  %v1514_v54 = vmul.f32 %v3384_v14, %v1482_v5  ;;  %v1547_v53 = vmul.f32 %v2377_v20, %v2256_v28  ;;  %v2378_v14 = vld [vmem:[%s2755_s7 + $0x58] sm:$0xff] }
 0x209   : > { %2279 = vpow2.f32 %v1097_v29  ;;  %v1499_v24 = vmul.f32 %v3405_v45, %v1467_v40  ;;  %v1515_v3 = vmul.f32 %v3412_v44, %v1483_v48  ;;  %vm1305_vm8 = vcmp.eq.f32.partialorder %v3428_v47, inf  ;;  %v2379_v20 = vld [vmem:[%s2755_s7 + $0xd8] sm:$0xff] }
 0x20a   : > { %2281 = vrcp.f32 %v868_v62  ;;  %vm1307_vm9 = vcmp.eq.f32.partialorder %v3428_v47, 0.0  ;;  %v1308_v28 = vand.u32 2147483648, %v3428_v47  ;;  %vm1417_vm10 = vcmp.eq.f32.partialorder %v3432_v56, inf }
 0x20b   : > { %v2262_v30 = vpop.eup %2261  ;;  %2283 = vrcp.f32 %v900_v50  ;;  %v1420_v10 = vand.u32 2147483648, %v3432_v56  ;;  %vm1419_vm11 = vcmp.eq.f32.partialorder %v3432_v56, 0.0  ;;  %vm1312_vm12 = vcmp.eq.f32.partialorder %v3441_v34, inf }
 0x20c   : > { %v1409_v35 = vmul.f32 %v2262_v30, %v3401_v39  ;;  %2285 = vpow2.f32 %v1856_v52  ;;  %v1315_v62 = vand.u32 2147483648, %v3441_v34  ;;  %vm1314_vm13 = vcmp.eq.f32.partialorder %v3441_v34, 0.0 }
 0x20d   : > { %v2264_v43 = vpop.eup %2263  ;;  %2287 = vpow2.f32 %v1826_v58 }
 0x20e   : > { %v3461_v13 = vpop.eup %2265  ;;  %v1411_v63 = vsel %vm1410_vm6, %v3401_v39, %v1409_v35  ;;  %2289 = vpow2.f32 %v1827_v31  ;;  %v1532_v42 = vmul.f32 %v2378_v14, %v2264_v43 }
 0x20f   : > { %v1414_v51 = vsel %vm1412_vm7, %v1413_v37, %v1411_v63  ;;  %v1164_v49 = vsub.f32 1.0, %v3461_v13  ;;  %v1196_v61 = vadd.f32 1.0, %v3461_v13  ;;  %2291 = vpow2.f32 %v1859_v22 }
 0x210   : > { %v1578_v0 = vmul.f32 %v1546_v46, %v1414_v51  ;;  %v2268_v39 = vpop.eup %2267 }
 0x211   : > { %v3475_v19 = vmul.f32 %v1196_v61, %v1164_v49  ;;  %v2270_v26 = vpop.eup %2269  ;;  %v1304_v27 = vmul.f32 %v2268_v39, %v3428_v47 }
 0x212   : > { %v1610_v21 = vadd.f32 %v1578_v0, %v1514_v54  ;;  %v2272_v23 = vpop.eup %2271  ;;  %v1416_v45 = vmul.f32 %v2270_v26, %v3432_v56  ;;  %v1484_v0 = vld [vmem:[%s2763_s2 + $0xd8] sm:$0xff] }
 0x213   : > { %2293 = vrsqrt.f32 %v3475_v19  ;;  %v2274_v44 = vpop.eup %2273  ;;  %v1306_v59 = vsel %vm1305_vm8, %v3428_v47, %v1304_v27  ;;  %v1069_v36 = vmul.f32 %v3299_v57, %v2272_v23  ;;  %vm1424_vm14 = vcmp.eq.f32.partialorder %v3475_v19, inf }
 0x214   : > { %1642 = vst [vmem:[%s3057_s29 + $0xc8] sm:$0xff] %v1610_v21  ;;  %v2276_v60 = vpop.eup %2275  ;;  %v1309_v1 = vsel %vm1307_vm9, %v1308_v28, %v1306_v59  ;;  %v1418_v32 = vsel %vm1417_vm10, %v3432_v56, %v1416_v45  ;;  %2295 = vpow2.f32 %v1829_v7  ;;  %v867_v33 = vadd.f32 1.0, %v2274_v44 }
 0x215   : > { %v1563_v16 = vmul.f32 %v1531_v4, %v1309_v1  ;;  %v1421_v41 = vsel %vm1419_vm11, %v1420_v10, %v1418_v32  ;;  %v1311_v2 = vmul.f32 %v2276_v60, %v3441_v34  ;;  %v1129_v6 = vmul.f32 1.442695, %v1069_v36  ;;  %v2278_v47 = vpop.eup %2277  ;;  %v567_v36 = vpop.f32.mrf.mxu0 }
 0x216   : > { %v1579_v9 = vmul.f32 %v1547_v53, %v1421_v41  ;;  %v3495_v29 = vpop.eup %2279  ;;  %v1500_v7 = vmul.f32 %v3416_v12, %v1468_v38  ;;  %v1427_v54 = vand.u32 2147483648, %v3475_v19  ;;  %v1548_v53 = vmul.f32 %v2379_v20, %v2278_v47  ;;  %v1485_v20 = vld [vmem:[%s2763_s2 + $0xe0] sm:$0xff] }
 0x217   : > { %v1595_v50 = vadd.f32 %v1563_v16, %v1499_v24  ;;  %v1313_v56 = vsel %vm1312_vm12, %v3441_v34, %v1311_v2  ;;  %2297 = vpow2.f32 %v1129_v6  ;;  %v2282_v52 = vpop.eup %2281  ;;  %v1149_v31 = vsub.f32 1.0, %v3495_v29  ;;  %v1469_v6 = vld [vmem:[%s2763_s2 + $0x60] sm:$0xff] }
 0x218   : > { %v1611_v58 = vadd.f32 %v1579_v9, %v1515_v3  ;;  %v1316_v30 = vsel %vm1314_vm13, %v1315_v62, %v1313_v56  ;;  %v1181_v22 = vadd.f32 1.0, %v3495_v29  ;;  %v2284_v35 = vpop.eup %2283  ;;  %v1054_v37 = vmul.f32 %v3299_v57, %v2282_v52 }
 0x219   : > { %1627 = vst [vmem:[%s3057_s29 + $0x50] sm:$0xff] %v1595_v50  ;;  %v1564_v43 = vmul.f32 %v1532_v42, %v1316_v30  ;;  %2299 = vpow2.f32 %v3454_v25  ;;  %v2286_v5 = vpop.eup %2285  ;;  %v1070_v17 = vmul.f32 %v3299_v57, %v2284_v35  ;;  %vm1426_vm15 = vcmp.eq.f32.partialorder %v3475_v19, 0.0 }
 0x21a   : > { %1643 = vst [vmem:[%s3057_s29 + $0xd0] sm:$0xff] %v1611_v58  ;;  %v3506_v34 = vmul.f32 %v1181_v22, %v1149_v31  ;;  %2301 = vpow2.f32 %v3451_v11  ;;  %v2288_v46 = vpop.eup %2287  ;;  %v1099_v40 = vmul.f32 1.442695, %v1054_v37  ;;  %v564_v11 = vadd.f32 %v3424_v15, %v2850_v8 }
 0x21b   : > { %v1596_v63 = vadd.f32 %v1564_v43, %v1500_v7  ;;  %2303 = vrcp.f32 %v867_v33  ;;  %v2290_v18 = vpop.eup %2289  ;;  %v1131_v25 = vmul.f32 1.442695, %v1070_v17  ;;  %v899_v24 = vadd.f32 1.0, %v2286_v5  ;;  %v2380_v33 = vld [vmem:[%s2755_s7 + $0x60] sm:$0xff]  ;;  %v647_v5 = vpop.f32.mrf.mxu1 }
 0x21c   : > { %2305 = vrsqrt.f32 %v3506_v34  ;;  %v2292_v12 = vpop.eup %2291  ;;  %v870_v4 = vadd.f32 1.0, %v2290_v18  ;;  %v869_v21 = vadd.f32 1.0, %v2288_v46  ;;  %v1516_v15 = vmul.f32 %v3461_v13, %v1484_v0 }
 0x21d   : > { %1628 = vst [vmem:[%s3057_s29 + $0x58] sm:$0xff] %v1596_v63  ;;  %2307 = vpow2.f32 %v1099_v40  ;;  %v902_v48 = vadd.f32 1.0, %v2292_v12  ;;  %v1828_v42 = vmul.f32 -1.442695, %v564_v11  ;;  %vm1319_vm0 = vcmp.eq.f32.partialorder %v3506_v34, inf }
 0x21e   : > { %2309 = vpow2.f32 %v1131_v25  ;;  %v1322_v2 = vand.u32 2147483648, %v3506_v34  ;;  %vm1321_vm1 = vcmp.eq.f32.partialorder %v3506_v34, 0.0  ;;  %v1501_v7 = vmul.f32 %v3495_v29, %v1469_v6 }
 0x21f   : > { %2311 = vrcp.f32 %v870_v4  ;;  %v648_v12 = vadd.f32 %v647_v5, %v2850_v8 }
 0x220   : > { %v2294_v51 = vpop.eup %2293  ;;  %2313 = vrcp.f32 %v902_v48 }
 0x221   : > { %v1423_v49 = vmul.f32 %v2294_v51, %v3475_v19  ;;  %v2296_v61 = vpop.eup %2295  ;;  %v1862_v11 = vmul.f32 -1.442695, %v648_v12 }
 0x222   : > { %v872_v3 = vadd.f32 1.0, %v2296_v61 }
 0x223   : > { %v1425_v39 = vsel %vm1424_vm14, %v3475_v19, %v1423_v49  ;;  %v644_v19 = vadd.f32 %v3426_v55, %v2850_v8  ;;  %v568_v55 = vadd.f32 %v567_v36, %v2850_v8 }
 0x224   : > { %v1428_v26 = vsel %vm1426_vm15, %v1427_v54, %v1425_v39  ;;  %v3521_v27 = vpop.eup %2297  ;;  %2315 = vrcp.f32 %v872_v3 }
 0x225   : > { %v1580_v14 = vmul.f32 %v1548_v53, %v1428_v26  ;;  %v1165_v23 = vsub.f32 1.0, %v3521_v27  ;;  %v1197_v28 = vadd.f32 1.0, %v3521_v27  ;;  %2317 = vrcp.f32 %v899_v24  ;;  %v2381_v24 = vld [vmem:[%s2755_s7 + $0xe0] sm:$0xff] }
 0x226   : > { %v2300_v45 = vpop.eup %2299  ;;  %2319 = vrcp.f32 %v869_v21  ;;  %v1860_v41 = vmul.f32 -1.442695, %v644_v19 }
 0x227   : > { %v1612_v44 = vadd.f32 %v1580_v14, %v1516_v15  ;;  %v2302_v59 = vpop.eup %2301  ;;  %v3528_v10 = vmul.f32 %v1197_v28, %v1165_v23  ;;  %v904_v13 = vadd.f32 1.0, %v2300_v45  ;;  %2321 = vpow2.f32 %v1828_v42  ;;  %v1470_v45 = vld [vmem:[%s2763_s2 + $0x68] sm:$0xff] }
 0x228   : > { %v2304_v60 = vpop.eup %2303  ;;  %v901_v56 = vadd.f32 1.0, %v2302_v59  ;;  %v1517_v14 = vmul.f32 %v3521_v27, %v1485_v20  ;;  %v2382_v27 = vld [vmem:[%s2755_s7 + $0x68] sm:$0xff]  ;;  %v2384_v20 = vld [vmem:[%s2755_s7 + $0x70] sm:$0xff] }
 0x229   : > { %1644 = vst [vmem:[%s3057_s29 + $0xd8] sm:$0xff] %v1612_v44  ;;  %v2306_v1 = vpop.eup %2305  ;;  %2323 = vrsqrt.f32 %v3528_v10  ;;  %v1533_v50 = vmul.f32 %v2380_v33, %v2304_v60  ;;  %vm1431_vm2 = vcmp.eq.f32.partialorder %v3528_v10, inf  ;;  %v1434_v0 = vand.u32 2147483648, %v3528_v10 }
 0x22a   : > { %v3532_v32 = vpop.eup %2307  ;;  %v1318_v16 = vmul.f32 %v2306_v1, %v3506_v34  ;;  %2325 = vrcp.f32 %v904_v13  ;;  %vm1433_vm3 = vcmp.eq.f32.partialorder %v3528_v10, 0.0 }
 0x22b   : > { %v1150_v47 = vsub.f32 1.0, %v3532_v32  ;;  %v1182_v9 = vadd.f32 1.0, %v3532_v32  ;;  %v3541_v62 = vpop.eup %2309  ;;  %2327 = vpow2.f32 %v1860_v41 }
 0x22c   : > { %v1320_v38 = vsel %vm1319_vm0, %v3506_v34, %v1318_v16  ;;  %v2312_v52 = vpop.eup %2311  ;;  %v1166_v31 = vsub.f32 1.0, %v3541_v62  ;;  %v1198_v22 = vadd.f32 1.0, %v3541_v62  ;;  %v1830_v34 = vmul.f32 -1.442695, %v568_v55 }
 0x22d   : > { %v1323_v58 = vsel %vm1321_vm1, %v1322_v2, %v1320_v38  ;;  %v3546_v30 = vmul.f32 %v1182_v9, %v1150_v47  ;;  %v2314_v35 = vpop.eup %2313  ;;  %v1055_v37 = vmul.f32 %v3299_v57, %v2312_v52  ;;  %v1502_v16 = vmul.f32 %v3532_v32, %v1470_v45  ;;  %v1486_v47 = vld [vmem:[%s2763_s2 + $0xe8] sm:$0xff] }
 0x22e   : > { %v1565_v43 = vmul.f32 %v1533_v50, %v1323_v58  ;;  %v3553_v46 = vmul.f32 %v1198_v22, %v1166_v31  ;;  %v1071_v40 = vmul.f32 %v3299_v57, %v2314_v35 }
 0x22f   : > { %2329 = vrsqrt.f32 %v3546_v30  ;;  %v1101_v63 = vmul.f32 1.442695, %v1055_v37  ;;  %vm1326_vm4 = vcmp.eq.f32.partialorder %v3546_v30, inf  ;;  %v1329_v19 = vand.u32 2147483648, %v3546_v30 }
 0x230   : > { %v1597_v17 = vadd.f32 %v1565_v43, %v1501_v7  ;;  %2331 = vrcp.f32 %v901_v56  ;;  %v1133_v25 = vmul.f32 1.442695, %v1071_v40  ;;  %vm1328_vm5 = vcmp.eq.f32.partialorder %v3546_v30, 0.0  ;;  %v2383_v56 = vld [vmem:[%s2755_s7 + $0xe8] sm:$0xff] }
 0x231   : > { %v2316_v18 = vpop.eup %2315  ;;  %2333 = vrsqrt.f32 %v3553_v46  ;;  %vm1438_vm6 = vcmp.eq.f32.partialorder %v3553_v46, inf  ;;  %v1441_v6 = vand.u32 2147483648, %v3553_v46  ;;  %vm1440_vm7 = vcmp.eq.f32.partialorder %v3553_v46, 0.0 }
 0x232   : > { %1629 = vst [vmem:[%s3057_s29 + $0x60] sm:$0xff] %v1597_v17  ;;  %v2318_v29 = vpop.eup %2317  ;;  %2335 = vpow2.f32 %v1101_v63  ;;  %v1056_v4 = vmul.f32 %v3299_v57, %v2316_v18  ;;  %v1518_v7 = vmul.f32 %v3541_v62, %v1486_v47 }
 0x233   : > { %v2320_v48 = vpop.eup %2319  ;;  %2337 = vpow2.f32 %v1830_v34  ;;  %v1549_v3 = vmul.f32 %v2381_v24, %v2318_v29 }
 0x234   : > { %v2322_v51 = vpop.eup %2321  ;;  %2339 = vpow2.f32 %v1133_v25  ;;  %v1103_v49 = vmul.f32 1.442695, %v1056_v4  ;;  %v1534_v13 = vmul.f32 %v2382_v27, %v2320_v48 }
 0x235   : > { %v871_v36 = vadd.f32 1.0, %v2322_v51 }
 0x236   : > { %v2324_v61 = vpop.eup %2323  ;;  %2341 = vpow2.f32 %v1103_v49 }
 0x237   : > { %v2326_v54 = vpop.eup %2325  ;;  %v1430_v8 = vmul.f32 %v2324_v61, %v3528_v10  ;;  %2343 = vpow2.f32 %v1862_v11 }
 0x238   : > { %v1072_v53 = vmul.f32 %v3299_v57, %v2326_v54  ;;  %v2328_v15 = vpop.eup %2327  ;;  %v1471_v54 = vld [vmem:[%s2763_s2 + $0x70] sm:$0xff] }
 0x239   : > { %v1432_v39 = vsel %vm1431_vm2, %v3528_v10, %v1430_v8  ;;  %v903_v52 = vadd.f32 1.0, %v2328_v15 }
 0x23a   : > { %v1435_v26 = vsel %vm1433_vm3, %v1434_v0, %v1432_v39  ;;  %v1135_v21 = vmul.f32 1.442695, %v1072_v53 }
 0x23b   : > { %v1581_v42 = vmul.f32 %v1549_v3, %v1435_v26 }
 0x23c   : > { %v2330_v23 = vpop.eup %2329  ;;  %2345 = vpow2.f32 %v1135_v21 }
 0x23d   : > { %v1613_v28 = vadd.f32 %v1581_v42, %v1517_v14  ;;  %v1325_v57 = vmul.f32 %v2330_v23, %v3546_v30  ;;  %v2332_v44 = vpop.eup %2331  ;;  %2347 = vrcp.f32 %v871_v36  ;;  %v1487_v14 = vld [vmem:[%s2763_s2 + $0xf0] sm:$0xff]  ;;  %v1472_v36 = vld [vmem:[%s2763_s2 + $0x78] sm:$0xff] }
 0x23e   : > { %v2334_v59 = vpop.eup %2333  ;;  %v1550_v32 = vmul.f32 %v2383_v56, %v2332_v44  ;;  %v2387_v56 = vld [vmem:[%s2755_s7 + $0xf8] sm:$0xff] }
 0x23f   : > { %1645 = vst [vmem:[%s3057_s29 + $0xe0] sm:$0xff] %v1613_v28  ;;  %v1327_v10 = vsel %vm1326_vm4, %v3546_v30, %v1325_v57  ;;  %v2336_v60 = vpop.eup %2335  ;;  %v1437_v41 = vmul.f32 %v2334_v59, %v3553_v46  ;;  %v2385_v28 = vld [vmem:[%s2755_s7 + $0xf0] sm:$0xff] }
 0x240   : > { %v1330_v1 = vsel %vm1328_vm5, %v1329_v19, %v1327_v10  ;;  %v2338_v55 = vpop.eup %2337  ;;  %v1151_v9 = vsub.f32 1.0, %v2336_v60  ;;  %v1183_v38 = vadd.f32 1.0, %v2336_v60  ;;  %v1503_v26 = vmul.f32 %v2336_v60, %v1471_v54 }
 0x241   : > { %v1566_v2 = vmul.f32 %v1534_v13, %v1330_v1  ;;  %v3582_v33 = vpop.eup %2339  ;;  %v1439_v50 = vsel %vm1438_vm6, %v3553_v46, %v1437_v41  ;;  %v873_v5 = vadd.f32 1.0, %v2338_v55 }
 0x242   : > { %v1442_v30 = vsel %vm1440_vm7, %v1441_v6, %v1439_v50  ;;  %v1215_v31 = vmul.f32 %v1183_v38, %v1151_v9  ;;  %v1167_v22 = vsub.f32 1.0, %v3582_v33  ;;  %v1199_v37 = vadd.f32 1.0, %v3582_v33 }
 0x243   : > { %v1598_v58 = vadd.f32 %v1566_v2, %v1502_v16  ;;  %v3588_v35 = vpop.eup %2341  ;;  %v1582_v43 = vmul.f32 %v1550_v32, %v1442_v30  ;;  %v1519_v10 = vmul.f32 %v3582_v33, %v1487_v14  ;;  %v2386_v16 = vld [vmem:[%s2755_s7 + $0x78] sm:$0xff]  ;;  %s2476_s7 = scalar_lea.vmem %s2475_s13, 8192 }
 0x244   : > { %2349 = vrsqrt.f32 %v1215_v31  ;;  %v2344_v34 = vpop.eup %2343  ;;  %v1231_v46 = vmul.f32 %v1199_v37, %v1167_v22  ;;  %v1152_v63 = vsub.f32 1.0, %v3588_v35  ;;  %v1184_v40 = vadd.f32 1.0, %v3588_v35  ;;  %v1488_v33 = vld [vmem:[%s2763_s2 + $0xf8] sm:$0xff]  ;;  %p2478_p5 = scmp.lt.s32.totalorder %s2476_s7, %s2470_s23 }
 0x245   : > { %1630 = vst [vmem:[%s3057_s29 + $0x68] sm:$0xff] %v1598_v58  ;;  %v1614_v17 = vadd.f32 %v1582_v43, %v1518_v7  ;;  %2351 = vrcp.f32 %v903_v52  ;;  %v905_v12 = vadd.f32 1.0, %v2344_v34  ;;  %vm1333_vm8 = vcmp.eq.f32.partialorder %v1215_v31, inf }
 0x246   : > { %2353 = vrsqrt.f32 %v1231_v46  ;;  %v1216_v62 = vmul.f32 %v1184_v40, %v1152_v63  ;;  %v1336_v61 = vand.u32 2147483648, %v1215_v31  ;;  %vm1335_vm9 = vcmp.eq.f32.partialorder %v1215_v31, 0.0  ;;  %p2479_p2 = por %p2478_p5, %p2477_p0 }
 0x247   : > { %1646 = vst [vmem:[%s3057_s29 + $0xe8] sm:$0xff] %v1614_v17  ;;  %2355 = vrcp.f32 %v873_v5  ;;  %vm1445_vm10 = vcmp.eq.f32.partialorder %v1231_v46, inf  ;;  %v1448_v15 = vand.u32 2147483648, %v1231_v46  ;;  %vm1447_vm11 = vcmp.eq.f32.partialorder %v1231_v46, 0.0 }
 0x248   : > { %2357 = vrsqrt.f32 %v1216_v62  ;;  %vm1340_vm12 = vcmp.eq.f32.partialorder %v1216_v62, inf  ;;  %v1343_v13 = vand.u32 2147483648, %v1216_v62  ;;  %vm1342_vm13 = vcmp.eq.f32.partialorder %v1216_v62, 0.0  ;;  %p2480_p10 = pnand %p2479_p2, %p2473_p13 }
 0x249   : > { %v3596_v18 = vpop.eup %2345  ;;  %2359 = vrcp.f32 %v905_v12  ;;  %v1504_v47 = vmul.f32 %v3588_v35, %v1472_v36 }
 0x24a   : > { %v1168_v29 = vsub.f32 1.0, %v3596_v18  ;;  %v1200_v25 = vadd.f32 1.0, %v3596_v18  ;;  %v2348_v48 = vpop.eup %2347  ;;  %v1520_v30 = vmul.f32 %v3596_v18, %v1488_v33 }
 0x24b   : > { %v1535_v53 = vmul.f32 %v2384_v20, %v2348_v48 }
 0x24c   : > { %v1232_v4 = vmul.f32 %v1200_v25, %v1168_v29 }
 0x24e   : > { %2361 = vrsqrt.f32 %v1232_v4  ;;  %vm1452_vm14 = vcmp.eq.f32.partialorder %v1232_v4, inf  ;;  %v1455_v38 = vand.u32 2147483648, %v1232_v4  ;;  %vm1454_vm15 = vcmp.eq.f32.partialorder %v1232_v4, 0.0 }
 0x251   : > { %v2350_v51 = vpop.eup %2349 }
 0x252   : > { %v1332_v49 = vmul.f32 %v2350_v51, %v1215_v31  ;;  %v2352_v11 = vpop.eup %2351 }
 0x253   : > { %v2354_v8 = vpop.eup %2353  ;;  %v1551_v57 = vmul.f32 %v2385_v28, %v2352_v11 }
 0x254   : > { %v1334_v0 = vsel %vm1333_vm8, %v1215_v31, %v1332_v49  ;;  %v1444_v24 = vmul.f32 %v2354_v8, %v1231_v46  ;;  %v2356_v3 = vpop.eup %2355 }
 0x255   : > { %v1337_v39 = vsel %vm1335_vm9, %v1336_v61, %v1334_v0  ;;  %v2358_v42 = vpop.eup %2357  ;;  %v1536_v41 = vmul.f32 %v2386_v16, %v2356_v3 }
 0x256   : > { %v1567_v21 = vmul.f32 %v1535_v53, %v1337_v39  ;;  %v1446_v23 = vsel %vm1445_vm10, %v1231_v46, %v1444_v24  ;;  %v1339_v19 = vmul.f32 %v2358_v42, %v1216_v62  ;;  %v2360_v59 = vpop.eup %2359 }
 0x257   : > { %v1449_v44 = vsel %vm1447_vm11, %v1448_v15, %v1446_v23  ;;  %v1552_v32 = vmul.f32 %v2387_v56, %v2360_v59 }
 0x258   : > { %v1599_v45 = vadd.f32 %v1567_v21, %v1503_v26  ;;  %v1583_v27 = vmul.f32 %v1551_v57, %v1449_v44  ;;  %v1341_v1 = vsel %vm1340_vm12, %v1216_v62, %v1339_v19 }
 0x259   : > { %v1344_v2 = vsel %vm1342_vm13, %v1343_v13, %v1341_v1 }
 0x25a   : > { %1631 = vst [vmem:[%s3057_s29 + $0x70] sm:$0xff] %v1599_v45  ;;  %v1615_v55 = vadd.f32 %v1583_v27, %v1519_v10  ;;  %v1568_v9 = vmul.f32 %v1536_v41, %v1344_v2 }
 0x25b   : > { %v2362_v60 = vpop.eup %2361 }
 0x25c   : > { %v1451_v6 = vmul.f32 %v2362_v60, %v1232_v4  ;;  %1647 = vst [vmem:[%s3057_s29 + $0xf0] sm:$0xff] %v1615_v55  ;;  %v1600_v52 = vadd.f32 %v1568_v9, %v1504_v47 }
 0x25e   : > { %v1453_v50 = vsel %vm1452_vm14, %v1232_v4, %v1451_v6  ;;  %1632 = vst [vmem:[%s3057_s29 + $0x78] sm:$0xff] %v1600_v52 }
 0x25f   : > { %v1456_v58 = vsel %vm1454_vm15, %v1455_v38, %v1453_v50 }
 0x260   : > { %v1584_v31 = vmul.f32 %v1552_v32, %v1456_v58 }
 0x262   : > { %v1616_v22 = vadd.f32 %v1584_v31, %v1520_v30 }
 0x264   : > { %1648 = vst [vmem:[%s3057_s29 + $0xf8] sm:$0xff] %v1616_v22 }
 0x265   : > { %2483 = shalt.err (!%p2480_p10)
}
 0x266   : > { %s2484_s26 = scalar_lea.hbm %s3619_s6, 4096  ;;  %s2488_s24 = scalar_lea.hbm %s3670_s5, 8192 }
 0x267   : > { %p2485_p1 = scmp.ne.s32.totalorder %s3619_s6, %s2484_s26  ;;  %p2489_p7 = scmp.lt.s32.totalorder %s3619_s6, %s3670_s5 }
 0x268   : > { %p2490_p8 = scmp.lt.s32.totalorder %s2488_s24, %s2484_s26 }
 0x269   : > { %p2486_p4 = pnand %p2485_p1, %p3697_p9 }
 0x26a   : > { %p2491_p11 = por %p2490_p8, %p2489_p7 }
 0x26b   : > { %p2487_p3 = pneg %p2486_p4 }
 0x26d   : > { %p2492_p6 = pnand %p2491_p11, %p2487_p3 }
 0x26f   : > { %2495 = shalt.err (!%p2492_p6)
}
 0x270   : > { %s2551_s27 = smov 128   ;;  %s2552_s29 = smov 8  }
 0x271   : > { %1896 = dma.vmem_to_hbm [thread:$0]  (%p3697_p9), %s3621_s8, 4096, %s3619_s6, %s1650_s22, %s2551_s27, %s2551_s27, %s2552_s29  }
 0x272 PF: > { %s1678_s15 = sand.u32 1, %s2530_s18   ;;  %p3698_p12 = scmp.ne.s32.totalorder %s3683_s25, 0 }
 0x273   : > { %p3699_p13 = scmp.ge.s32.totalorder %s2542_s21, 2  ;;  %s1679_s9 = scalar_lea.sflag [#allocation4], %s1678_s15 }
 0x275   : > { %p1910_p0 = pnand %p3699_p13, %p3698_p12 }
 0x277   : > { %p1911_p5 = pneg %p1910_p0 }
 0x279   : > { %2525 = dma.done.wait (%p1911_p5), %s1679_s9, 4096  }
 0x27a   : > { %2527 = vsyncadd (%p1911_p5), %s1679_s9, 4294963200  ;;  %s3700_s16 = sld [smem:[#allocation13_spill]]  ;;  %p21_p2 = scmp.ge.s32.totalorder %s2637_s30, 4  }
 0x27b   : > { %s3701_s20 = sld [smem:[#allocation14_spill]]  ;;  %s3702_s18 = smov %s2534_s19 }
 0x27c   : > { %s3704_s21 = smov %s2637_s30  ;;  %23 = sbr.rel (!%p21_p2) target bundleno = 10 (0xa), region = 102 }
 0x280   : > { %s3703_s19 = smov %s3700_s16 }
 0x281   :  { %1684 = vsyncpa [#allocation3], 1 }
 0x282   :  { %1686 = vsyncpa [#allocation3 + $0x1], 1 }
 0x283   :  { %1687 = vsyncpa [#allocation6], 1 }
 0x284   :  { %1689 = vsyncpa [#allocation6 + $0x1], 1 }
 0x285   :  { %1690 = vsyncpa [#allocation4], 1 }
 0x286   :  { %1692 = vsyncpa [#allocation4 + $0x1], 1 }

</bundles_post_ra>
